<compile_context>
chip_gen: v7x
topology: tpu7x:2x2x1
jax: 0.10.0
libtpu: 0.0.40
codegen_flags: <defaults>
</compile_context>

<pallas_src>
import functools

import jax
import jax.numpy as jnp
import numpy as np
from jax import lax
from jax.experimental import pallas as pl
from jax.experimental.pallas import tpu as pltpu

_BN_EPS = 1e-5


def _round_up(x, m):
    return (x + m - 1) // m * m


def _vmem_budget_bytes():
    """Per-generation scoped-VMEM budget used for tile sizing and vmem_limit_bytes."""
    try:
        kind = jax.devices()[0].device_kind.lower()
    except Exception:
        kind = ""
    if "v5 lite" in kind or "v5e" in kind or "v5lite" in kind:
        return 16 * 2**20      # v5e: small scoped VMEM, 1 vst slot -> modest tiles
    if "v7" in kind:
        return 32 * 2**20      # v7x: only 64 MiB physical VMEM -> stay well under
    if "v6" in kind:
        return 64 * 2**20      # v6e: 128 MiB physical -> big resident tiles amortize
    return 32 * 2**20


def _pick_gemm_tiles(M, K, N, budget_bytes):
    """Largest (tm, tn, tk) whose double-buffered working set fits the VMEM budget."""
    tn = N if N <= 512 else 256        # lane dim: full when small, else multiple of 128
    tk = K if K <= 1024 else 512       # reduction dim: multiple of 128 when tiled
    tm = _round_up(min(M, 2048), 8)
    while tm > 8:
        # 2x double-buffered (x tile + w tile + out tile + bias) + f32 accumulator
        need = 2 * (tm * tk + tk * tn + tm * tn + tn) * 4 + tm * tn * 4
        if need <= budget_bytes:
            break
        tm = max(8, _round_up(tm // 2, 8))
    return tm, tn, tk


# ----------------------------------------------------------------------------
# Kernel A: tiled GEMM + bias (+ optional ReLU).  BN scale is pre-folded into w.
#   out = maybe_relu(x @ w + bias)
# ----------------------------------------------------------------------------
def _gemm_bias_kernel(x_ref, w_ref, b_ref, o_ref, acc_ref, *, relu):
    @pl.when(pl.program_id(2) == 0)
    def _():
        acc_ref[...] = jnp.zeros_like(acc_ref)

    acc_ref[...] += jnp.dot(x_ref[...], w_ref[...],
                            preferred_element_type=jnp.float32)

    @pl.when(pl.program_id(2) == pl.num_programs(2) - 1)
    def _():
        y = acc_ref[...] + b_ref[...]
        if relu:
            y = jnp.maximum(y, 0.0)
        o_ref[...] = y.astype(o_ref.dtype)


def matmul_bias(x, w, bias, *, relu):
    M, K = x.shape
    K2, N = w.shape
    assert K == K2
    budget = _vmem_budget_bytes()
    tm, tn, tk = _pick_gemm_tiles(M, K, N, budget)
    Mp, Kp, Np = _round_up(M, tm), _round_up(K, tk), _round_up(N, tn)
    if (Mp, Kp) != (M, K):
        x = jnp.pad(x, ((0, Mp - M), (0, Kp - K)))
    if (Kp, Np) != (K, N):
        w = jnp.pad(w, ((0, Kp - K), (0, Np - N)))
    b2 = jnp.pad(bias.astype(jnp.float32), (0, Np - N)).reshape(1, Np)

    out = pl.pallas_call(
        functools.partial(_gemm_bias_kernel, relu=relu),
        out_shape=jax.ShapeDtypeStruct((Mp, Np), jnp.float32),
        grid_spec=pltpu.PrefetchScalarGridSpec(
            num_scalar_prefetch=0,
            grid=(Mp // tm, Np // tn, Kp // tk),
            in_specs=[
                pl.BlockSpec((tm, tk), lambda i, j, k: (i, k)),
                pl.BlockSpec((tk, tn), lambda i, j, k: (k, j)),
                pl.BlockSpec((1, tn), lambda i, j, k: (0, j)),
            ],
            out_specs=pl.BlockSpec((tm, tn), lambda i, j, k: (i, j)),
            scratch_shapes=[pltpu.VMEM((tm, tn), jnp.float32)],
        ),
        compiler_params=pltpu.CompilerParams(
            dimension_semantics=("parallel", "parallel", "arbitrary"),
            vmem_limit_bytes=budget,
        ),
    )(x, w, b2)
    if (Mp, Np) != (M, N):
        out = out[:M, :N]
    return out


# ----------------------------------------------------------------------------
# Kernel B: fused conv3 + shortcut-conv + residual add + ReLU
#   out = relu(a @ wa + b @ wb + bias)     (K dims are small 1x1-conv channels)
# ----------------------------------------------------------------------------
def _dual_gemm_add_relu_kernel(a_ref, wa_ref, b_ref, wb_ref, bias_ref, o_ref):
    acc = jnp.dot(a_ref[...], wa_ref[...], preferred_element_type=jnp.float32)
    acc = acc + jnp.dot(b_ref[...], wb_ref[...], preferred_element_type=jnp.float32)
    o_ref[...] = jnp.maximum(acc + bias_ref[...], 0.0).astype(o_ref.dtype)


def dual_matmul_add_relu(a, wa, b, wb, bias):
    M, Ka = a.shape
    _, Kb = b.shape
    N = wa.shape[1]
    budget = _vmem_budget_bytes()
    tm, tn, _ = _pick_gemm_tiles(M, Ka + Kb, N, budget)
    Mp, Np = _round_up(M, tm), _round_up(N, tn)
    if Mp != M:
        a = jnp.pad(a, ((0, Mp - M), (0, 0)))
        b = jnp.pad(b, ((0, Mp - M), (0, 0)))
    if Np != N:
        wa = jnp.pad(wa, ((0, 0), (0, Np - N)))
        wb = jnp.pad(wb, ((0, 0), (0, Np - N)))
    bias2 = jnp.pad(bias.astype(jnp.float32), (0, Np - N)).reshape(1, Np)

    out = pl.pallas_call(
        _dual_gemm_add_relu_kernel,
        out_shape=jax.ShapeDtypeStruct((Mp, Np), jnp.float32),
        grid=(Mp // tm, Np // tn),
        in_specs=[
            pl.BlockSpec((tm, Ka), lambda i, j: (i, 0)),
            pl.BlockSpec((Ka, tn), lambda i, j: (0, j)),
            pl.BlockSpec((tm, Kb), lambda i, j: (i, 0)),
            pl.BlockSpec((Kb, tn), lambda i, j: (0, j)),
            pl.BlockSpec((1, tn), lambda i, j: (0, j)),
        ],
        out_specs=pl.BlockSpec((tm, tn), lambda i, j: (i, j)),
        compiler_params=pltpu.CompilerParams(
            dimension_semantics=("parallel", "parallel"),
            vmem_limit_bytes=budget,
        ),
    )(a, wa, b, wb, bias2)
    if (Mp, Np) != (M, N):
        out = out[:M, :N]
    return out


# ----------------------------------------------------------------------------
# Kernel C: 3x3 / stride-2 / pad-1 conv + folded BN + ReLU, no im2col.
# h1 is decomposed into 4 parity planes (even/odd rows x even/odd cols), each
# zero-padded by one row/col on the top/left.  The 9 taps become 9 plain
# shifted slices of those planes:
#   out[oh,ow] = sum_{kh,kw} h1p[2oh+kh, 2ow+kw] @ W[kh,kw]
#   (kh,kw)->(plane, row/col offset into the padded plane) derived analytically.
# ----------------------------------------------------------------------------
def _conv3x3_s2_kernel(pee_ref, peo_ref, poe_ref, poo_ref, w_ref, b_ref, o_ref):
    _, H2, W2, C = o_ref.shape
    # (plane_ref, row offset, col offset, tap index kh*3+kw)
    terms = (
        (pee_ref, 1, 1, 4),   # (kh,kw)=(1,1)
        (peo_ref, 1, 1, 5),   # (1,2)
        (peo_ref, 1, 0, 3),   # (1,0)
        (poe_ref, 1, 1, 7),   # (2,1)
        (poe_ref, 0, 1, 1),   # (0,1)
        (poo_ref, 1, 1, 8),   # (2,2)
        (poo_ref, 1, 0, 6),   # (2,0)
        (poo_ref, 0, 1, 2),   # (0,2)
        (poo_ref, 0, 0, 0),   # (0,0)
    )
    acc = jnp.zeros((H2 * W2, C), jnp.float32)
    for ref, dh, dw, tap in terms:
        patch = ref[0, dh:dh + H2, dw:dw + W2, :].reshape(H2 * W2, C)
        acc = acc + jnp.dot(patch, w_ref[tap],
                            preferred_element_type=jnp.float32)
    y = jnp.maximum(acc + b_ref[...], 0.0)
    o_ref[...] = y.reshape(1, H2, W2, C).astype(o_ref.dtype)


def conv3x3_s2_bn_relu(h1_nhwc, w_taps, bias):
    N, H, W, C = h1_nhwc.shape
    H2, W2 = H // 2, W // 2
    # TODO(synk): parity split / top-left pad of h1 and the NCHW<->NHWC transposes
    # are pure-layout XLA glue (zero data expansion), not Pallas compute.
    pee = h1_nhwc[:, 0::2, 0::2, :]
    peo = h1_nhwc[:, 0::2, 1::2, :]
    poe = h1_nhwc[:, 1::2, 0::2, :]
    poo = h1_nhwc[:, 1::2, 1::2, :]

    def padp(p):
        return jnp.pad(p, ((0, 0), (1, 0), (1, 0), (0, 0)))

    pee, peo, poe, poo = padp(pee), padp(peo), padp(poe), padp(poo)
    b2 = bias.astype(jnp.float32).reshape(1, C)

    budget = _vmem_budget_bytes()
    plane_spec = pl.BlockSpec((1, H2 + 1, W2 + 1, C), lambda n: (n, 0, 0, 0))
    return pl.pallas_call(
        _conv3x3_s2_kernel,
        out_shape=jax.ShapeDtypeStruct((N, H2, W2, C), jnp.float32),
        grid=(N,),
        in_specs=[plane_spec, plane_spec, plane_spec, plane_spec,
                  pl.BlockSpec((9, C, C), lambda n: (0, 0, 0)),
                  pl.BlockSpec((1, C), lambda n: (0, 0))],
        out_specs=pl.BlockSpec((1, H2, W2, C), lambda n: (n, 0, 0, 0)),
        compiler_params=pltpu.CompilerParams(
            dimension_semantics=("parallel",),
            vmem_limit_bytes=budget,
        ),
    )(pee, peo, poe, poo, w_taps, b2)


# ----------------------------------------------------------------------------
# Parameter init (deterministic, synthetic) and BN folding
# ----------------------------------------------------------------------------
def _bn_init(key, c):
    k1, k2, k3, k4 = jax.random.split(key, 4)
    gamma = 1.0 + 0.1 * jax.random.normal(k1, (c,), jnp.float32)
    beta = 0.1 * jax.random.normal(k2, (c,), jnp.float32)
    mean = 0.1 * jax.random.normal(k3, (c,), jnp.float32)
    var = jax.random.uniform(k4, (c,), jnp.float32, minval=0.5, maxval=1.5)
    return (gamma, beta, mean, var)


def init_params(key, in_ch, out_ch):
    ks = jax.random.split(key, 12)
    p = {}
    p["w1"] = 0.2 * jax.random.normal(ks[0], (out_ch, in_ch, 1, 1), jnp.float32)
    p["b1"] = 0.1 * jax.random.normal(ks[1], (out_ch,), jnp.float32)
    p["bn1"] = _bn_init(ks[2], out_ch)
    p["w2"] = 0.1 * jax.random.normal(ks[3], (out_ch, out_ch, 3, 3), jnp.float32)
    p["b2"] = 0.1 * jax.random.normal(ks[4], (out_ch,), jnp.float32)
    p["bn2"] = _bn_init(ks[5], out_ch)
    p["w3"] = 0.2 * jax.random.normal(ks[6], (out_ch, out_ch, 1, 1), jnp.float32)
    p["b3"] = 0.1 * jax.random.normal(ks[7], (out_ch,), jnp.float32)
    p["bn3"] = _bn_init(ks[8], out_ch)
    p["wsc"] = 0.2 * jax.random.normal(ks[9], (out_ch, in_ch, 1, 1), jnp.float32)
    p["bsc"] = 0.1 * jax.random.normal(ks[10], (out_ch,), jnp.float32)
    return p


def _fold_bn(bn, conv_bias):
    gamma, beta, mean, var = bn
    scale = gamma / jnp.sqrt(var + _BN_EPS)
    bias = beta - mean * scale + conv_bias * scale
    return scale, bias


# ----------------------------------------------------------------------------
# Strided_block forward (Pallas-backed)
# ----------------------------------------------------------------------------
def strided_block_forward(params, x_nchw):
    N, Cin, H, W = x_nchw.shape
    Cout = params["w1"].shape[0]
    H2, W2 = H // 2, W // 2

    x = jnp.transpose(x_nchw, (0, 2, 3, 1)).astype(jnp.float32)    # NHWC
    x_flat = x.reshape(N * H * W, Cin)

    # conv1 (1x1) + BN + ReLU   (BN scale folded into weight columns)
    s1, bb1 = _fold_bn(params["bn1"], params["b1"])
    w1 = params["w1"].reshape(Cout, Cin).T * s1[None, :]
    h1 = matmul_bias(x_flat, w1, bb1, relu=True).reshape(N, H, W, Cout)

    # conv2 (3x3, stride 2, pad 1) + BN + ReLU — 9-tap in-kernel accumulation
    s2, bb2 = _fold_bn(params["bn2"], params["b2"])
    w2_taps = jnp.transpose(params["w2"], (2, 3, 1, 0)).reshape(9, Cout, Cout)
    w2_taps = w2_taps * s2[None, None, :]
    h2 = conv3x3_s2_bn_relu(h1, w2_taps, bb2).reshape(N * H2 * W2, Cout)

    # Shortcut: AvgPool2d(2,2) commutes exactly with the 1x1 conv -> pool x first
    # (4x fewer shortcut GEMM rows, no full-res shortcut tensor in HBM).
    x_pooled = x.reshape(N, H2, 2, W2, 2, Cin).mean(axis=(2, 4))
    x_pooled = x_pooled.reshape(N * H2 * W2, Cin)

    # conv3 (1x1) + BN fused with shortcut conv + residual add + final ReLU
    s3, bb3 = _fold_bn(params["bn3"], params["b3"])
    w3 = params["w3"].reshape(Cout, Cout).T * s3[None, :]
    wsc = params["wsc"].reshape(Cout, Cin).T
    out = dual_matmul_add_relu(h2, w3, x_pooled, wsc, bb3 + params["bsc"])

    out = out.reshape(N, H2, W2, Cout)
    return jnp.transpose(out, (0, 3, 1, 2))                         # back to NCHW


# ----------------------------------------------------------------------------
# Pure-JAX reference (correctness check)
# ----------------------------------------------------------------------------
def ref_forward(params, x):
    def conv(x, w, b, stride=1, pad=0):
        y = lax.conv_general_dilated(
            x, w, (stride, stride), [(pad, pad), (pad, pad)],
            dimension_numbers=("NCHW", "OIHW", "NCHW"),
        )
        return y + b[None, :, None, None]

    def bn(x, bnp):
        g, be, m, v = bnp
        return ((x - m[None, :, None, None]) / jnp.sqrt(v[None, :, None, None] + _BN_EPS)
                * g[None, :, None, None] + be[None, :, None, None])

    h = jax.nn.relu(bn(conv(x, params["w1"], params["b1"]), params["bn1"]))
    h = jax.nn.relu(bn(conv(h, params["w2"], params["b2"], stride=2, pad=1), params["bn2"]))
    h = bn(conv(h, params["w3"], params["b3"]), params["bn3"])
    sc = conv(x, params["wsc"], params["bsc"])
    N, C, H, W = sc.shape
    sc = sc.reshape(N, C, H // 2, 2, W // 2, 2).mean(axis=(3, 5))
    return jax.nn.relu(sc + h)


if __name__ == "__main__":
    key = jax.random.PRNGKey(0)
    kx, kp = jax.random.split(key)
    in_ch, out_ch = 4, 8
    x = jax.random.normal(kx, (2, in_ch, 16, 16), jnp.float32)
    params = init_params(kp, in_ch, out_ch)

    fwd = jax.jit(strided_block_forward)
    out = jax.block_until_ready(fwd(params, x))

    ref = ref_forward(params, x)
    np.testing.assert_allclose(np.asarray(out), np.asarray(ref), rtol=1e-4, atol=1e-4)
    print("KERNEL_OK")
</pallas_src>

<mosaic_0001>
module attributes {stable_mosaic.version = 11 : i64} {
  func.func @_gemm_bias_kernel(%arg0: i32, %arg1: i32, %arg2: i32, %arg3: memref<512x4xf32, #tpu.memory_space<vmem>>, %arg4: memref<4x8xf32, #tpu.memory_space<vmem>>, %arg5: memref<1x8xf32, #tpu.memory_space<vmem>>, %arg6: memref<512x8xf32, #tpu.memory_space<vmem>>, %arg7: memref<512x8xf32, #tpu.memory_space<vmem>>) attributes {dimension_semantics = [#tpu.dimension_semantics<parallel>, #tpu.dimension_semantics<parallel>, #tpu.dimension_semantics<arbitrary>], iteration_bounds = array<i64: 1, 1, 1>, scalar_prefetch = 0 : i64, scratch_operands = 1 : i64, tpu.core_type = #tpu.core_type<tc>, window_params = [{transform_indices = @transform_0, window_bounds = array<i64: 512, 4>}, {transform_indices = @transform_1, window_bounds = array<i64: 4, 8>}, {transform_indices = @transform_2, window_bounds = array<i64: 1, 8>}, {transform_indices = @transform_3, window_bounds = array<i64: 512, 8>}]} {
    %c0_i32 = arith.constant 0 : i32
    %0 = arith.cmpi eq, %arg2, %c0_i32 : i32
    %1 = arith.extui %0 : i1 to i32
    %c0_i32_0 = arith.constant 0 : i32
    %2 = arith.cmpi ne, %1, %c0_i32_0 : i32
    scf.if %2 {
      %cst_10 = arith.constant 0.000000e+00 : f32
      %12 = vector.broadcast %cst_10 : f32 to vector<512x8xf32>
      %c0_11 = arith.constant 0 : index
      %c0_12 = arith.constant 0 : index
      %13 = vector.load %arg7[%c0_11, %c0_12] : memref<512x8xf32, #tpu.memory_space<vmem>>, vector<512x8xf32>
      tpu.vector_store %arg7[%c0_11, %c0_12], %12 {strides = array<i32>} : memref<512x8xf32, #tpu.memory_space<vmem>>, vector<512x8xf32>,
    } else {
    }
    %c0 = arith.constant 0 : index
    %c0_1 = arith.constant 0 : index
    %3 = vector.load %arg7[%c0, %c0_1] : memref<512x8xf32, #tpu.memory_space<vmem>>, vector<512x8xf32>
    %c0_2 = arith.constant 0 : index
    %c0_3 = arith.constant 0 : index
    %4 = vector.load %arg3[%c0_2, %c0_3] : memref<512x4xf32, #tpu.memory_space<vmem>>, vector<512x4xf32>
    %c0_4 = arith.constant 0 : index
    %c0_5 = arith.constant 0 : index
    %5 = vector.load %arg4[%c0_4, %c0_5] : memref<4x8xf32, #tpu.memory_space<vmem>>, vector<4x8xf32>
    %cst = arith.constant dense<0.000000e+00> : vector<512x8xf32>
    %6 = tpu.matmul %4, %5, %cst {dimension_numbers = #tpu.dot_dimension_numbers<[1], [0], [0], [1], [0, 0, 1, 1], [], []>} : vector<512x4xf32>, vector<4x8xf32>, vector<512x8xf32> -> vector<512x8xf32>
    %7 = arith.addf %3, %6 : vector<512x8xf32>
    %c0_6 = arith.constant 0 : index
    %c0_7 = arith.constant 0 : index
    %8 = vector.load %arg7[%c0_6, %c0_7] : memref<512x8xf32, #tpu.memory_space<vmem>>, vector<512x8xf32>
    tpu.vector_store %arg7[%c0_6, %c0_7], %7 {strides = array<i32>} : memref<512x8xf32, #tpu.memory_space<vmem>>, vector<512x8xf32>,
    %c0_i32_8 = arith.constant 0 : i32
    %9 = arith.cmpi eq, %arg2, %c0_i32_8 : i32
    %10 = arith.extui %9 : i1 to i32
    %c0_i32_9 = arith.constant 0 : i32
    %11 = arith.cmpi ne, %10, %c0_i32_9 : i32
    scf.if %11 {
      %c0_10 = arith.constant 0 : index
      %c0_11 = arith.constant 0 : index
      %12 = vector.load %arg7[%c0_10, %c0_11] : memref<512x8xf32, #tpu.memory_space<vmem>>, vector<512x8xf32>
      %c0_12 = arith.constant 0 : index
      %c0_13 = arith.constant 0 : index
      %13 = vector.load %arg5[%c0_12, %c0_13] : memref<1x8xf32, #tpu.memory_space<vmem>>, vector<1x8xf32>
      %14 = vector.broadcast %13 : vector<1x8xf32> to vector<512x8xf32>
      %15 = arith.addf %12, %14 : vector<512x8xf32>
      %cst_14 = arith.constant 0.000000e+00 : f32
      %16 = vector.broadcast %cst_14 : f32 to vector<512x8xf32>
      %17 = arith.maximumf %15, %16 : vector<512x8xf32>
      %c0_15 = arith.constant 0 : index
      %c0_16 = arith.constant 0 : index
      %18 = vector.load %arg6[%c0_15, %c0_16] : memref<512x8xf32, #tpu.memory_space<vmem>>, vector<512x8xf32>
      tpu.vector_store %arg6[%c0_15, %c0_16], %17 {strides = array<i32>} : memref<512x8xf32, #tpu.memory_space<vmem>>, vector<512x8xf32>,
    } else {
    }
    return
  }
  func.func @transform_0(%arg0: i32, %arg1: i32, %arg2: i32) -> (i32, i32) {
    %c0_i32 = arith.constant 0 : i32
    return %arg0, %arg2 : i32, i32
  }
  func.func @transform_1(%arg0: i32, %arg1: i32, %arg2: i32) -> (i32, i32) {
    %c0_i32 = arith.constant 0 : i32
    return %arg2, %arg1 : i32, i32
  }
  func.func @transform_2(%arg0: i32, %arg1: i32, %arg2: i32) -> (i32, i32) {
    %c0_i32 = arith.constant 0 : i32
    %c0_i32_0 = arith.constant 0 : i32
    return %c0_i32, %arg1 : i32, i32
  }
  func.func @transform_3(%arg0: i32, %arg1: i32, %arg2: i32) -> (i32, i32) {
    %c0_i32 = arith.constant 0 : i32
    return %arg0, %arg1 : i32, i32
  }
}

module attributes {stable_mosaic.version = 11 : i64} {
  func.func @_dual_gemm_add_relu_kernel(%arg0: i32, %arg1: i32, %arg2: memref<128x8xf32, #tpu.memory_space<vmem>>, %arg3: memref<8x8xf32, #tpu.memory_space<vmem>>, %arg4: memref<128x4xf32, #tpu.memory_space<vmem>>, %arg5: memref<4x8xf32, #tpu.memory_space<vmem>>, %arg6: memref<1x8xf32, #tpu.memory_space<vmem>>, %arg7: memref<128x8xf32, #tpu.memory_space<vmem>>) attributes {dimension_semantics = [#tpu.dimension_semantics<parallel>, #tpu.dimension_semantics<parallel>], iteration_bounds = array<i64: 1, 1>, scalar_prefetch = 0 : i64, scratch_operands = 0 : i64, tpu.core_type = #tpu.core_type<tc>, window_params = [{transform_indices = @transform_0, window_bounds = array<i64: 128, 8>}, {transform_indices = @transform_1, window_bounds = array<i64: 8, 8>}, {transform_indices = @transform_2, window_bounds = array<i64: 128, 4>}, {transform_indices = @transform_3, window_bounds = array<i64: 4, 8>}, {transform_indices = @transform_4, window_bounds = array<i64: 1, 8>}, {transform_indices = @transform_5, window_bounds = array<i64: 128, 8>}]} {
    %c0 = arith.constant 0 : index
    %c0_0 = arith.constant 0 : index
    %0 = vector.load %arg2[%c0, %c0_0] : memref<128x8xf32, #tpu.memory_space<vmem>>, vector<128x8xf32>
    %c0_1 = arith.constant 0 : index
    %c0_2 = arith.constant 0 : index
    %1 = vector.load %arg3[%c0_1, %c0_2] : memref<8x8xf32, #tpu.memory_space<vmem>>, vector<8x8xf32>
    %cst = arith.constant dense<0.000000e+00> : vector<128x8xf32>
    %2 = tpu.matmul %0, %1, %cst {dimension_numbers = #tpu.dot_dimension_numbers<[1], [0], [0], [1], [0, 0, 1, 1], [], []>} : vector<128x8xf32>, vector<8x8xf32>, vector<128x8xf32> -> vector<128x8xf32>
    %c0_3 = arith.constant 0 : index
    %c0_4 = arith.constant 0 : index
    %3 = vector.load %arg4[%c0_3, %c0_4] : memref<128x4xf32, #tpu.memory_space<vmem>>, vector<128x4xf32>
    %c0_5 = arith.constant 0 : index
    %c0_6 = arith.constant 0 : index
    %4 = vector.load %arg5[%c0_5, %c0_6] : memref<4x8xf32, #tpu.memory_space<vmem>>, vector<4x8xf32>
    %cst_7 = arith.constant dense<0.000000e+00> : vector<128x8xf32>
    %5 = tpu.matmul %3, %4, %cst_7 {dimension_numbers = #tpu.dot_dimension_numbers<[1], [0], [0], [1], [0, 0, 1, 1], [], []>} : vector<128x4xf32>, vector<4x8xf32>, vector<128x8xf32> -> vector<128x8xf32>
    %6 = arith.addf %2, %5 : vector<128x8xf32>
    %c0_8 = arith.constant 0 : index
    %c0_9 = arith.constant 0 : index
    %7 = vector.load %arg6[%c0_8, %c0_9] : memref<1x8xf32, #tpu.memory_space<vmem>>, vector<1x8xf32>
    %8 = vector.broadcast %7 : vector<1x8xf32> to vector<128x8xf32>
    %9 = arith.addf %6, %8 : vector<128x8xf32>
    %cst_10 = arith.constant 0.000000e+00 : f32
    %10 = vector.broadcast %cst_10 : f32 to vector<128x8xf32>
    %11 = arith.maximumf %9, %10 : vector<128x8xf32>
    %c0_11 = arith.constant 0 : index
    %c0_12 = arith.constant 0 : index
    %12 = vector.load %arg7[%c0_11, %c0_12] : memref<128x8xf32, #tpu.memory_space<vmem>>, vector<128x8xf32>
    tpu.vector_store %arg7[%c0_11, %c0_12], %11 {strides = array<i32>} : memref<128x8xf32, #tpu.memory_space<vmem>>, vector<128x8xf32>,
    return
  }
  func.func @transform_0(%arg0: i32, %arg1: i32) -> (i32, i32) {
    %c0_i32 = arith.constant 0 : i32
    %c0_i32_0 = arith.constant 0 : i32
    return %arg0, %c0_i32 : i32, i32
  }
  func.func @transform_1(%arg0: i32, %arg1: i32) -> (i32, i32) {
    %c0_i32 = arith.constant 0 : i32
    %c0_i32_0 = arith.constant 0 : i32
    return %c0_i32, %arg1 : i32, i32
  }
  func.func @transform_2(%arg0: i32, %arg1: i32) -> (i32, i32) {
    %c0_i32 = arith.constant 0 : i32
    %c0_i32_0 = arith.constant 0 : i32
    return %arg0, %c0_i32 : i32, i32
  }
  func.func @transform_3(%arg0: i32, %arg1: i32) -> (i32, i32) {
    %c0_i32 = arith.constant 0 : i32
    %c0_i32_0 = arith.constant 0 : i32
    return %c0_i32, %arg1 : i32, i32
  }
  func.func @transform_4(%arg0: i32, %arg1: i32) -> (i32, i32) {
    %c0_i32 = arith.constant 0 : i32
    %c0_i32_0 = arith.constant 0 : i32
    return %c0_i32, %arg1 : i32, i32
  }
  func.func @transform_5(%arg0: i32, %arg1: i32) -> (i32, i32) {
    %c0_i32 = arith.constant 0 : i32
    return %arg0, %arg1 : i32, i32
  }
}

module attributes {stable_mosaic.version = 11 : i64} {
  func.func @_conv3x3_s2_kernel(%arg0: i32, %arg1: memref<1x9x9x8xf32, #tpu.memory_space<vmem>>, %arg2: memref<1x9x9x8xf32, #tpu.memory_space<vmem>>, %arg3: memref<1x9x9x8xf32, #tpu.memory_space<vmem>>, %arg4: memref<1x9x9x8xf32, #tpu.memory_space<vmem>>, %arg5: memref<9x8x8xf32, #tpu.memory_space<vmem>>, %arg6: memref<1x8xf32, #tpu.memory_space<vmem>>, %arg7: memref<1x8x8x8xf32, #tpu.memory_space<vmem>>) attributes {dimension_semantics = [#tpu.dimension_semantics<parallel>], iteration_bounds = array<i64: 2>, scalar_prefetch = 0 : i64, scratch_operands = 0 : i64, tpu.core_type = #tpu.core_type<tc>, window_params = [{transform_indices = @transform_0, window_bounds = array<i64: 1, 9, 9, 8>}, {transform_indices = @transform_1, window_bounds = array<i64: 1, 9, 9, 8>}, {transform_indices = @transform_2, window_bounds = array<i64: 1, 9, 9, 8>}, {transform_indices = @transform_3, window_bounds = array<i64: 1, 9, 9, 8>}, {pipeline_mode = #tpu.pipeline_mode<synchronous>, transform_indices = @transform_4, window_bounds = array<i64: 9, 8, 8>}, {pipeline_mode = #tpu.pipeline_mode<synchronous>, transform_indices = @transform_5, window_bounds = array<i64: 1, 8>}, {transform_indices = @transform_6, window_bounds = array<i64: 1, 8, 8, 8>}]} {
    %cst = arith.constant 0.000000e+00 : f32
    %0 = vector.broadcast %cst : f32 to vector<64x8xf32>
    %c0 = arith.constant 0 : index
    %c1 = arith.constant 1 : index
    %c1_0 = arith.constant 1 : index
    %c0_1 = arith.constant 0 : index
    %1 = vector.load %arg1[%c0, %c1, %c1_0, %c0_1] : memref<1x9x9x8xf32, #tpu.memory_space<vmem>>, vector<1x8x8x8xf32>
    %2 = vector.shape_cast %1 : vector<1x8x8x8xf32> to vector<8x8x8xf32>
    %3 = vector.shape_cast %2 : vector<8x8x8xf32> to vector<64x8xf32>
    %c4 = arith.constant 4 : index
    %c0_2 = arith.constant 0 : index
    %c0_3 = arith.constant 0 : index
    %4 = vector.load %arg5[%c4, %c0_2, %c0_3] : memref<9x8x8xf32, #tpu.memory_space<vmem>>, vector<1x8x8xf32>
    %5 = vector.shape_cast %4 : vector<1x8x8xf32> to vector<8x8xf32>
    %cst_4 = arith.constant dense<0.000000e+00> : vector<64x8xf32>
    %6 = tpu.matmul %3, %5, %cst_4 {dimension_numbers = #tpu.dot_dimension_numbers<[1], [0], [0], [1], [0, 0, 1, 1], [], []>} : vector<64x8xf32>, vector<8x8xf32>, vector<64x8xf32> -> vector<64x8xf32>
    %7 = arith.addf %0, %6 : vector<64x8xf32>
    %c0_5 = arith.constant 0 : index
    %c1_6 = arith.constant 1 : index
    %c1_7 = arith.constant 1 : index
    %c0_8 = arith.constant 0 : index
    %8 = vector.load %arg2[%c0_5, %c1_6, %c1_7, %c0_8] : memref<1x9x9x8xf32, #tpu.memory_space<vmem>>, vector<1x8x8x8xf32>
    %9 = vector.shape_cast %8 : vector<1x8x8x8xf32> to vector<8x8x8xf32>
    %10 = vector.shape_cast %9 : vector<8x8x8xf32> to vector<64x8xf32>
    %c5 = arith.constant 5 : index
    %c0_9 = arith.constant 0 : index
    %c0_10 = arith.constant 0 : index
    %11 = vector.load %arg5[%c5, %c0_9, %c0_10] : memref<9x8x8xf32, #tpu.memory_space<vmem>>, vector<1x8x8xf32>
    %12 = vector.shape_cast %11 : vector<1x8x8xf32> to vector<8x8xf32>
    %cst_11 = arith.constant dense<0.000000e+00> : vector<64x8xf32>
    %13 = tpu.matmul %10, %12, %cst_11 {dimension_numbers = #tpu.dot_dimension_numbers<[1], [0], [0], [1], [0, 0, 1, 1], [], []>} : vector<64x8xf32>, vector<8x8xf32>, vector<64x8xf32> -> vector<64x8xf32>
    %14 = arith.addf %7, %13 : vector<64x8xf32>
    %c0_12 = arith.constant 0 : index
    %c1_13 = arith.constant 1 : index
    %c0_14 = arith.constant 0 : index
    %c0_15 = arith.constant 0 : index
    %15 = vector.load %arg2[%c0_12, %c1_13, %c0_14, %c0_15] : memref<1x9x9x8xf32, #tpu.memory_space<vmem>>, vector<1x8x8x8xf32>
    %16 = vector.shape_cast %15 : vector<1x8x8x8xf32> to vector<8x8x8xf32>
    %17 = vector.shape_cast %16 : vector<8x8x8xf32> to vector<64x8xf32>
    %c3 = arith.constant 3 : index
    %c0_16 = arith.constant 0 : index
    %c0_17 = arith.constant 0 : index
    %18 = vector.load %arg5[%c3, %c0_16, %c0_17] : memref<9x8x8xf32, #tpu.memory_space<vmem>>, vector<1x8x8xf32>
    %19 = vector.shape_cast %18 : vector<1x8x8xf32> to vector<8x8xf32>
    %cst_18 = arith.constant dense<0.000000e+00> : vector<64x8xf32>
    %20 = tpu.matmul %17, %19, %cst_18 {dimension_numbers = #tpu.dot_dimension_numbers<[1], [0], [0], [1], [0, 0, 1, 1], [], []>} : vector<64x8xf32>, vector<8x8xf32>, vector<64x8xf32> -> vector<64x8xf32>
    %21 = arith.addf %14, %20 : vector<64x8xf32>
    %c0_19 = arith.constant 0 : index
    %c1_20 = arith.constant 1 : index
    %c1_21 = arith.constant 1 : index
    %c0_22 = arith.constant 0 : index
    %22 = vector.load %arg3[%c0_19, %c1_20, %c1_21, %c0_22] : memref<1x9x9x8xf32, #tpu.memory_space<vmem>>, vector<1x8x8x8xf32>
    %23 = vector.shape_cast %22 : vector<1x8x8x8xf32> to vector<8x8x8xf32>
    %24 = vector.shape_cast %23 : vector<8x8x8xf32> to vector<64x8xf32>
    %c7 = arith.constant 7 : index
    %c0_23 = arith.constant 0 : index
    %c0_24 = arith.constant 0 : index
    %25 = vector.load %arg5[%c7, %c0_23, %c0_24] : memref<9x8x8xf32, #tpu.memory_space<vmem>>, vector<1x8x8xf32>
    %26 = vector.shape_cast %25 : vector<1x8x8xf32> to vector<8x8xf32>
    %cst_25 = arith.constant dense<0.000000e+00> : vector<64x8xf32>
    %27 = tpu.matmul %24, %26, %cst_25 {dimension_numbers = #tpu.dot_dimension_numbers<[1], [0], [0], [1], [0, 0, 1, 1], [], []>} : vector<64x8xf32>, vector<8x8xf32>, vector<64x8xf32> -> vector<64x8xf32>
    %28 = arith.addf %21, %27 : vector<64x8xf32>
    %c0_26 = arith.constant 0 : index
    %c0_27 = arith.constant 0 : index
    %c1_28 = arith.constant 1 : index
    %c0_29 = arith.constant 0 : index
    %29 = vector.load %arg3[%c0_26, %c0_27, %c1_28, %c0_29] : memref<1x9x9x8xf32, #tpu.memory_space<vmem>>, vector<1x8x8x8xf32>
    %30 = vector.shape_cast %29 : vector<1x8x8x8xf32> to vector<8x8x8xf32>
    %31 = vector.shape_cast %30 : vector<8x8x8xf32> to vector<64x8xf32>
    %c1_30 = arith.constant 1 : index
    %c0_31 = arith.constant 0 : index
    %c0_32 = arith.constant 0 : index
    %32 = vector.load %arg5[%c1_30, %c0_31, %c0_32] : memref<9x8x8xf32, #tpu.memory_space<vmem>>, vector<1x8x8xf32>
    %33 = vector.shape_cast %32 : vector<1x8x8xf32> to vector<8x8xf32>
    %cst_33 = arith.constant dense<0.000000e+00> : vector<64x8xf32>
    %34 = tpu.matmul %31, %33, %cst_33 {dimension_numbers = #tpu.dot_dimension_numbers<[1], [0], [0], [1], [0, 0, 1, 1], [], []>} : vector<64x8xf32>, vector<8x8xf32>, vector<64x8xf32> -> vector<64x8xf32>
    %35 = arith.addf %28, %34 : vector<64x8xf32>
    %c0_34 = arith.constant 0 : index
    %c1_35 = arith.constant 1 : index
    %c1_36 = arith.constant 1 : index
    %c0_37 = arith.constant 0 : index
    %36 = vector.load %arg4[%c0_34, %c1_35, %c1_36, %c0_37] : memref<1x9x9x8xf32, #tpu.memory_space<vmem>>, vector<1x8x8x8xf32>
    %37 = vector.shape_cast %36 : vector<1x8x8x8xf32> to vector<8x8x8xf32>
    %38 = vector.shape_cast %37 : vector<8x8x8xf32> to vector<64x8xf32>
    %c8 = arith.constant 8 : index
    %c0_38 = arith.constant 0 : index
    %c0_39 = arith.constant 0 : index
    %39 = vector.load %arg5[%c8, %c0_38, %c0_39] : memref<9x8x8xf32, #tpu.memory_space<vmem>>, vector<1x8x8xf32>
    %40 = vector.shape_cast %39 : vector<1x8x8xf32> to vector<8x8xf32>
    %cst_40 = arith.constant dense<0.000000e+00> : vector<64x8xf32>
    %41 = tpu.matmul %38, %40, %cst_40 {dimension_numbers = #tpu.dot_dimension_numbers<[1], [0], [0], [1], [0, 0, 1, 1], [], []>} : vector<64x8xf32>, vector<8x8xf32>, vector<64x8xf32> -> vector<64x8xf32>
    %42 = arith.addf %35, %41 : vector<64x8xf32>
    %c0_41 = arith.constant 0 : index
    %c1_42 = arith.constant 1 : index
    %c0_43 = arith.constant 0 : index
    %c0_44 = arith.constant 0 : index
    %43 = vector.load %arg4[%c0_41, %c1_42, %c0_43, %c0_44] : memref<1x9x9x8xf32, #tpu.memory_space<vmem>>, vector<1x8x8x8xf32>
    %44 = vector.shape_cast %43 : vector<1x8x8x8xf32> to vector<8x8x8xf32>
    %45 = vector.shape_cast %44 : vector<8x8x8xf32> to vector<64x8xf32>
    %c6 = arith.constant 6 : index
    %c0_45 = arith.constant 0 : index
    %c0_46 = arith.constant 0 : index
    %46 = vector.load %arg5[%c6, %c0_45, %c0_46] : memref<9x8x8xf32, #tpu.memory_space<vmem>>, vector<1x8x8xf32>
    %47 = vector.shape_cast %46 : vector<1x8x8xf32> to vector<8x8xf32>
    %cst_47 = arith.constant dense<0.000000e+00> : vector<64x8xf32>
    %48 = tpu.matmul %45, %47, %cst_47 {dimension_numbers = #tpu.dot_dimension_numbers<[1], [0], [0], [1], [0, 0, 1, 1], [], []>} : vector<64x8xf32>, vector<8x8xf32>, vector<64x8xf32> -> vector<64x8xf32>
    %49 = arith.addf %42, %48 : vector<64x8xf32>
    %c0_48 = arith.constant 0 : index
    %c0_49 = arith.constant 0 : index
    %c1_50 = arith.constant 1 : index
    %c0_51 = arith.constant 0 : index
    %50 = vector.load %arg4[%c0_48, %c0_49, %c1_50, %c0_51] : memref<1x9x9x8xf32, #tpu.memory_space<vmem>>, vector<1x8x8x8xf32>
    %51 = vector.shape_cast %50 : vector<1x8x8x8xf32> to vector<8x8x8xf32>
    %52 = vector.shape_cast %51 : vector<8x8x8xf32> to vector<64x8xf32>
    %c2 = arith.constant 2 : index
    %c0_52 = arith.constant 0 : index
    %c0_53 = arith.constant 0 : index
    %53 = vector.load %arg5[%c2, %c0_52, %c0_53] : memref<9x8x8xf32, #tpu.memory_space<vmem>>, vector<1x8x8xf32>
    %54 = vector.shape_cast %53 : vector<1x8x8xf32> to vector<8x8xf32>
    %cst_54 = arith.constant dense<0.000000e+00> : vector<64x8xf32>
    %55 = tpu.matmul %52, %54, %cst_54 {dimension_numbers = #tpu.dot_dimension_numbers<[1], [0], [0], [1], [0, 0, 1, 1], [], []>} : vector<64x8xf32>, vector<8x8xf32>, vector<64x8xf32> -> vector<64x8xf32>
    %56 = arith.addf %49, %55 : vector<64x8xf32>
    %c0_55 = arith.constant 0 : index
    %c0_56 = arith.constant 0 : index
    %c0_57 = arith.constant 0 : index
    %c0_58 = arith.constant 0 : index
    %57 = vector.load %arg4[%c0_55, %c0_56, %c0_57, %c0_58] : memref<1x9x9x8xf32, #tpu.memory_space<vmem>>, vector<1x8x8x8xf32>
    %58 = vector.shape_cast %57 : vector<1x8x8x8xf32> to vector<8x8x8xf32>
    %59 = vector.shape_cast %58 : vector<8x8x8xf32> to vector<64x8xf32>
    %c0_59 = arith.constant 0 : index
    %c0_60 = arith.constant 0 : index
    %c0_61 = arith.constant 0 : index
    %60 = vector.load %arg5[%c0_59, %c0_60, %c0_61] : memref<9x8x8xf32, #tpu.memory_space<vmem>>, vector<1x8x8xf32>
    %61 = vector.shape_cast %60 : vector<1x8x8xf32> to vector<8x8xf32>
    %cst_62 = arith.constant dense<0.000000e+00> : vector<64x8xf32>
    %62 = tpu.matmul %59, %61, %cst_62 {dimension_numbers = #tpu.dot_dimension_numbers<[1], [0], [0], [1], [0, 0, 1, 1], [], []>} : vector<64x8xf32>, vector<8x8xf32>, vector<64x8xf32> -> vector<64x8xf32>
    %63 = arith.addf %56, %62 : vector<64x8xf32>
    %c0_63 = arith.constant 0 : index
    %c0_64 = arith.constant 0 : index
    %64 = vector.load %arg6[%c0_63, %c0_64] : memref<1x8xf32, #tpu.memory_space<vmem>>, vector<1x8xf32>
    %65 = vector.broadcast %64 : vector<1x8xf32> to vector<64x8xf32>
    %66 = arith.addf %63, %65 : vector<64x8xf32>
    %cst_65 = arith.constant 0.000000e+00 : f32
    %67 = vector.broadcast %cst_65 : f32 to vector<64x8xf32>
    %68 = arith.maximumf %66, %67 : vector<64x8xf32>
    %69 = vector.shape_cast %68 : vector<64x8xf32> to vector<1x8x8x8xf32>
    %c0_66 = arith.constant 0 : index
    %c0_67 = arith.constant 0 : index
    %c0_68 = arith.constant 0 : index
    %c0_69 = arith.constant 0 : index
    %70 = vector.load %arg7[%c0_66, %c0_67, %c0_68, %c0_69] : memref<1x8x8x8xf32, #tpu.memory_space<vmem>>, vector<1x8x8x8xf32>
    tpu.vector_store %arg7[%c0_66, %c0_67, %c0_68, %c0_69], %69 {strides = array<i32>} : memref<1x8x8x8xf32, #tpu.memory_space<vmem>>, vector<1x8x8x8xf32>,
    return
  }
  func.func @transform_0(%arg0: i32) -> (i32, i32, i32, i32) {
    %c0_i32 = arith.constant 0 : i32
    %c0_i32_0 = arith.constant 0 : i32
    %c0_i32_1 = arith.constant 0 : i32
    %c0_i32_2 = arith.constant 0 : i32
    return %arg0, %c0_i32, %c0_i32_0, %c0_i32_1 : i32, i32, i32, i32
  }
  func.func @transform_1(%arg0: i32) -> (i32, i32, i32, i32) {
    %c0_i32 = arith.constant 0 : i32
    %c0_i32_0 = arith.constant 0 : i32
    %c0_i32_1 = arith.constant 0 : i32
    %c0_i32_2 = arith.constant 0 : i32
    return %arg0, %c0_i32, %c0_i32_0, %c0_i32_1 : i32, i32, i32, i32
  }
  func.func @transform_2(%arg0: i32) -> (i32, i32, i32, i32) {
    %c0_i32 = arith.constant 0 : i32
    %c0_i32_0 = arith.constant 0 : i32
    %c0_i32_1 = arith.constant 0 : i32
    %c0_i32_2 = arith.constant 0 : i32
    return %arg0, %c0_i32, %c0_i32_0, %c0_i32_1 : i32, i32, i32, i32
  }
  func.func @transform_3(%arg0: i32) -> (i32, i32, i32, i32) {
    %c0_i32 = arith.constant 0 : i32
    %c0_i32_0 = arith.constant 0 : i32
    %c0_i32_1 = arith.constant 0 : i32
    %c0_i32_2 = arith.constant 0 : i32
    return %arg0, %c0_i32, %c0_i32_0, %c0_i32_1 : i32, i32, i32, i32
  }
  func.func @transform_4(%arg0: i32) -> (i32, i32, i32) {
    %c0_i32 = arith.constant 0 : i32
    %c0_i32_0 = arith.constant 0 : i32
    %c0_i32_1 = arith.constant 0 : i32
    %c0_i32_2 = arith.constant 0 : i32
    return %c0_i32, %c0_i32_0, %c0_i32_1 : i32, i32, i32
  }
  func.func @transform_5(%arg0: i32) -> (i32, i32) {
    %c0_i32 = arith.constant 0 : i32
    %c0_i32_0 = arith.constant 0 : i32
    %c0_i32_1 = arith.constant 0 : i32
    return %c0_i32, %c0_i32_0 : i32, i32
  }
  func.func @transform_6(%arg0: i32) -> (i32, i32, i32, i32) {
    %c0_i32 = arith.constant 0 : i32
    %c0_i32_0 = arith.constant 0 : i32
    %c0_i32_1 = arith.constant 0 : i32
    %c0_i32_2 = arith.constant 0 : i32
    return %arg0, %c0_i32, %c0_i32_0, %c0_i32_1 : i32, i32, i32, i32
  }
}

</mosaic_0001>

<bundles_post_ra>
// kernel: strided_block_forward.5
= control target key start
LH: loop header
LB: loop body
LE: loop exit
PB: predicated region body
PF: predicated region fallthrough
CT: control target
= control target key end

     0   :  { %vm103_vm0 = vcmask 1043456   ;;  %vm54_vm1 = vcmask 31744   ;;  %vm252_vm2 = vcmask 64512   ;;  %s890_s3 = inlined_call_operand.vmem [shape: f32[4,8], index: 3, kind: input, shape index: {}]   ;;  %s891_s1 = inlined_call_operand.vmem [shape: f32[8,8], index: 1, kind: input, shape index: {}]   ;;  %s892_s2 = inlined_call_operand.vmem [shape: f32[128,4], index: 2, kind: input, shape index: {}]   ;;  %s893_s0 = inlined_call_operand.vmem [shape: f32[128,8], index: 0, kind: input, shape index: {}]   ;;  %s894_s4 = inlined_call_operand.vmem [shape: f32[1,8], index: 4, kind: input, shape index: {}]   ;;  %s895_s5 = inlined_call_operand.vmem [shape: f32[128,8], index: 5, kind: output, shape index: {}]  }
   0x1   :  { %v53_v0 = vld [vmem:[%s890_s3] sm:$0xf]  ;;  %v38_v4 = vld [vmem:[%s892_s2 + $0x8] sm:$0xff]  ;;  %v39_v6 = vld [vmem:[%s892_s2 + $0x10] sm:$0xff] }
   0x2   :  { %v36_v1 = vld [vmem:[%s891_s1] sm:$0xff]  ;;  %573 = vmatprep.subr.msk.mxu1 %vm103_vm0, %v53_v0  ;;  %v21_v5 = vld [vmem:[%s893_s0 + $0x8] sm:$0xff]  ;;  %v22_v7 = vld [vmem:[%s893_s0 + $0x10] sm:$0xff] }
   0x3   :  { %v37_v2 = vld [vmem:[%s892_s2] sm:$0xff]  ;;  %599 = vmatprep.subr.mxu0 %v36_v1  ;;  %574 = vmatpush3.msk.msra.mxu1 %vm103_vm0, %v53_v0  ;;  %v40_v8 = vld [vmem:[%s892_s2 + $0x18] sm:$0xff]  ;;  %v42_v12 = vld [vmem:[%s892_s2 + $0x28] sm:$0xff] }
   0x4   :  { %v20_v3 = vld [vmem:[%s893_s0] sm:$0xff]  ;;  %575 = vmatprep.mubr.msk.f32.mxu1 %vm54_vm1, %v37_v2  ;;  %600 = vmatpush3.msra.mxu0 %v36_v1  ;;  %v23_v9 = vld [vmem:[%s893_s0 + $0x18] sm:$0xff]  ;;  %v25_v13 = vld [vmem:[%s893_s0 + $0x28] sm:$0xff] }
   0x5   :  { %601 = vmatprep.mubr.msk.f32.mxu0 %vm252_vm2, %v20_v3  ;;  %576 = vmatmul.mubr.msk.f32.vlgmr.msra.gmra.mrb[0].mxu1 %vm54_vm1, %v38_v4  ;;  %v41_v10 = vld [vmem:[%s892_s2 + $0x20] sm:$0xff]  ;;  %v43_v14 = vld [vmem:[%s892_s2 + $0x30] sm:$0xff]  ;;  %v44_v16 = vld [vmem:[%s892_s2 + $0x38] sm:$0xff] }
   0x6   :  { %602 = vmatmul.mubr.msk.f32.vlgmr.msra.gmra.mrb[0].mxu0 %vm252_vm2, %v21_v5  ;;  %578 = vmatprep.mubr.msk.f32.mxu1 %vm54_vm1, %v39_v6  ;;  %v24_v11 = vld [vmem:[%s893_s0 + $0x20] sm:$0xff]  ;;  %v26_v15 = vld [vmem:[%s893_s0 + $0x30] sm:$0xff]  ;;  %v27_v17 = vld [vmem:[%s893_s0 + $0x38] sm:$0xff] }
   0x7   :  { %604 = vmatprep.mubr.msk.f32.mxu0 %vm252_vm2, %v22_v7  ;;  %v45_v18 = vld [vmem:[%s892_s2 + $0x40] sm:$0xff]  ;;  %v46_v20 = vld [vmem:[%s892_s2 + $0x48] sm:$0xff]  ;;  %v47_v22 = vld [vmem:[%s892_s2 + $0x50] sm:$0xff] }
   0x8   :  { %v28_v19 = vld [vmem:[%s893_s0 + $0x40] sm:$0xff]  ;;  %v29_v21 = vld [vmem:[%s893_s0 + $0x48] sm:$0xff]  ;;  %v30_v23 = vld [vmem:[%s893_s0 + $0x50] sm:$0xff] }
   0x9   :  { %579 = vmatmul.mubr.msk.f32.gmra.mrb[2].mxu1 %vm54_vm1, %v40_v8  ;;  %v48_v24 = vld [vmem:[%s892_s2 + $0x58] sm:$0xff]  ;;  %v49_v26 = vld [vmem:[%s892_s2 + $0x60] sm:$0xff]  ;;  %v50_v28 = vld [vmem:[%s892_s2 + $0x68] sm:$0xff] }
   0xa   :  { %605 = vmatmul.mubr.msk.f32.gmra.mrb[2].mxu0 %vm252_vm2, %v23_v9  ;;  %581 = vmatprep.mubr.msk.f32.mxu1 %vm54_vm1, %v41_v10  ;;  %v31_v25 = vld [vmem:[%s893_s0 + $0x58] sm:$0xff]  ;;  %v32_v27 = vld [vmem:[%s893_s0 + $0x60] sm:$0xff]  ;;  %v33_v29 = vld [vmem:[%s893_s0 + $0x68] sm:$0xff] }
   0xb   :  { %607 = vmatprep.mubr.msk.f32.mxu0 %vm252_vm2, %v24_v11  ;;  %v51_v30 = vld [vmem:[%s892_s2 + $0x70] sm:$0xff]  ;;  %v52_v32 = vld [vmem:[%s892_s2 + $0x78] sm:$0xff]  ;;  %v808_v36 = vld [vmem:[%s894_s4] ss:$0 sm:$0xff] }
   0xc   :  { %v34_v31 = vld [vmem:[%s893_s0 + $0x70] sm:$0xff]  ;;  %v35_v33 = vld [vmem:[%s893_s0 + $0x78] sm:$0xff] }
   0xd   :  { %582 = vmatmul.mubr.msk.f32.gmra.mrb[4].mxu1 %vm54_vm1, %v42_v12 }
   0xe   :  { %608 = vmatmul.mubr.msk.f32.gmra.mrb[4].mxu0 %vm252_vm2, %v25_v13  ;;  %584 = vmatprep.mubr.msk.f32.mxu1 %vm54_vm1, %v43_v14 }
   0xf   :  { %610 = vmatprep.mubr.msk.f32.mxu0 %vm252_vm2, %v26_v15 }
  0x11   :  { %585 = vmatmul.mubr.msk.f32.gmra.mrb[6].mxu1 %vm54_vm1, %v44_v16 }
  0x12   :  { %611 = vmatmul.mubr.msk.f32.gmra.mrb[6].mxu0 %vm252_vm2, %v27_v17  ;;  %587 = vmatprep.mubr.msk.f32.mxu1 %vm54_vm1, %v45_v18 }
  0x13   :  { %613 = vmatprep.mubr.msk.f32.mxu0 %vm252_vm2, %v28_v19 }
  0x15   :  { %588 = vmatmul.mubr.msk.f32.gmra.mrb[8].mxu1 %vm54_vm1, %v46_v20 }
  0x16   :  { %614 = vmatmul.mubr.msk.f32.gmra.mrb[8].mxu0 %vm252_vm2, %v29_v21  ;;  %590 = vmatprep.mubr.msk.f32.mxu1 %vm54_vm1, %v47_v22 }
  0x17   :  { %616 = vmatprep.mubr.msk.f32.mxu0 %vm252_vm2, %v30_v23 }
  0x19   :  { %591 = vmatmul.mubr.msk.f32.gmra.mrb[10].mxu1 %vm54_vm1, %v48_v24 }
  0x1a   :  { %617 = vmatmul.mubr.msk.f32.gmra.mrb[10].mxu0 %vm252_vm2, %v31_v25  ;;  %593 = vmatprep.mubr.msk.f32.mxu1 %vm54_vm1, %v49_v26 }
  0x1b   :  { %619 = vmatprep.mubr.msk.f32.mxu0 %vm252_vm2, %v32_v27 }
  0x1d   :  { %594 = vmatmul.mubr.msk.f32.gmra.mrb[12].mxu1 %vm54_vm1, %v50_v28 }
  0x1e   :  { %620 = vmatmul.mubr.msk.f32.gmra.mrb[12].mxu0 %vm252_vm2, %v33_v29  ;;  %596 = vmatprep.mubr.msk.f32.mxu1 %vm54_vm1, %v51_v30 }
  0x1f   :  { %622 = vmatprep.mubr.msk.f32.mxu0 %vm252_vm2, %v34_v31 }
  0x21   :  { %597 = vmatmul.mubr.msk.f32.gmra.mrb[14].mxu1 %vm54_vm1, %v52_v32 }
  0x22   :  { %623 = vmatmul.mubr.msk.f32.gmra.mrb[14].mxu0 %vm252_vm2, %v35_v33 }
  0xd8   :  { %v577_v34 = vpop.f32.mrb[0].mxu1 }
  0xd9   :  { %v603_v35 = vpop.f32.mrb[0].mxu0  ;;  %v173_v38 = vpop.f32.mrb[1].mxu1 }
  0xda   :  { %v373_v37 = vadd.f32 %v603_v35, %v577_v34  ;;  %v367_v39 = vpop.f32.mrb[1].mxu0 }
  0xdb   :  { %v368_v40 = vadd.f32 %v367_v39, %v173_v38 }
  0xdc   :  { %v454_v41 = vadd.f32 %v808_v36, %v373_v37  ;;  %v580_v43 = vpop.f32.mrb[2].mxu1 }
  0xdd   :  { %v453_v42 = vadd.f32 %v808_v36, %v368_v40  ;;  %v606_v44 = vpop.f32.mrb[2].mxu0  ;;  %v183_v47 = vpop.f32.mrb[3].mxu1 }
  0xde   :  { %v470_v45 = vmax.f32 %v454_v41, 0.0  ;;  %v383_v46 = vadd.f32 %v606_v44, %v580_v43  ;;  %v377_v48 = vpop.f32.mrb[3].mxu0 }
  0xdf   :  { %v469_v49 = vmax.f32 %v453_v42, 0.0  ;;  %v378_v50 = vadd.f32 %v377_v48, %v183_v47 }
  0xe0   :  { %486 = vst.msk [vmem:[%s895_s5 + $0x8] sm:$0xff] %vm252_vm2, %v470_v45  ;;  %v456_v51 = vadd.f32 %v808_v36, %v383_v46  ;;  %v583_v53 = vpop.f32.mrb[4].mxu1 }
  0xe1   :  { %485 = vst.msk [vmem:[%s895_s5] sm:$0xff] %vm252_vm2, %v469_v49  ;;  %v455_v52 = vadd.f32 %v808_v36, %v378_v50  ;;  %v609_v54 = vpop.f32.mrb[4].mxu0  ;;  %v193_v57 = vpop.f32.mrb[5].mxu1 }
  0xe2   :  { %v472_v55 = vmax.f32 %v456_v51, 0.0  ;;  %v393_v56 = vadd.f32 %v609_v54, %v583_v53  ;;  %v387_v58 = vpop.f32.mrb[5].mxu0 }
  0xe3   :  { %v471_v59 = vmax.f32 %v455_v52, 0.0  ;;  %v388_v60 = vadd.f32 %v387_v58, %v193_v57 }
  0xe4   :  { %488 = vst.msk [vmem:[%s895_s5 + $0x18] sm:$0xff] %vm252_vm2, %v472_v55  ;;  %v458_v61 = vadd.f32 %v808_v36, %v393_v56  ;;  %v586_v63 = vpop.f32.mrb[6].mxu1 }
  0xe5   :  { %487 = vst.msk [vmem:[%s895_s5 + $0x10] sm:$0xff] %vm252_vm2, %v471_v59  ;;  %v457_v62 = vadd.f32 %v808_v36, %v388_v60  ;;  %v612_v0 = vpop.f32.mrb[6].mxu0  ;;  %v203_v3 = vpop.f32.mrb[7].mxu1 }
  0xe6   :  { %v474_v1 = vmax.f32 %v458_v61, 0.0  ;;  %v403_v2 = vadd.f32 %v612_v0, %v586_v63  ;;  %v397_v4 = vpop.f32.mrb[7].mxu0 }
  0xe7   :  { %v473_v5 = vmax.f32 %v457_v62, 0.0  ;;  %v398_v6 = vadd.f32 %v397_v4, %v203_v3 }
  0xe8   :  { %490 = vst.msk [vmem:[%s895_s5 + $0x28] sm:$0xff] %vm252_vm2, %v474_v1  ;;  %v460_v7 = vadd.f32 %v808_v36, %v403_v2  ;;  %v589_v9 = vpop.f32.mrb[8].mxu1 }
  0xe9   :  { %489 = vst.msk [vmem:[%s895_s5 + $0x20] sm:$0xff] %vm252_vm2, %v473_v5  ;;  %v459_v8 = vadd.f32 %v808_v36, %v398_v6  ;;  %v615_v10 = vpop.f32.mrb[8].mxu0  ;;  %v213_v13 = vpop.f32.mrb[9].mxu1 }
  0xea   :  { %v476_v11 = vmax.f32 %v460_v7, 0.0  ;;  %v413_v12 = vadd.f32 %v615_v10, %v589_v9  ;;  %v407_v14 = vpop.f32.mrb[9].mxu0 }
  0xeb   :  { %v475_v15 = vmax.f32 %v459_v8, 0.0  ;;  %v408_v16 = vadd.f32 %v407_v14, %v213_v13 }
  0xec   :  { %492 = vst.msk [vmem:[%s895_s5 + $0x38] sm:$0xff] %vm252_vm2, %v476_v11  ;;  %v462_v17 = vadd.f32 %v808_v36, %v413_v12  ;;  %v592_v19 = vpop.f32.mrb[10].mxu1 }
  0xed   :  { %491 = vst.msk [vmem:[%s895_s5 + $0x30] sm:$0xff] %vm252_vm2, %v475_v15  ;;  %v461_v18 = vadd.f32 %v808_v36, %v408_v16  ;;  %v618_v20 = vpop.f32.mrb[10].mxu0  ;;  %v223_v23 = vpop.f32.mrb[11].mxu1 }
  0xee   :  { %v478_v21 = vmax.f32 %v462_v17, 0.0  ;;  %v423_v22 = vadd.f32 %v618_v20, %v592_v19  ;;  %v417_v24 = vpop.f32.mrb[11].mxu0 }
  0xef   :  { %v477_v25 = vmax.f32 %v461_v18, 0.0  ;;  %v418_v26 = vadd.f32 %v417_v24, %v223_v23 }
  0xf0   :  { %494 = vst.msk [vmem:[%s895_s5 + $0x48] sm:$0xff] %vm252_vm2, %v478_v21  ;;  %v464_v27 = vadd.f32 %v808_v36, %v423_v22  ;;  %v595_v29 = vpop.f32.mrb[12].mxu1 }
  0xf1   :  { %493 = vst.msk [vmem:[%s895_s5 + $0x40] sm:$0xff] %vm252_vm2, %v477_v25  ;;  %v463_v28 = vadd.f32 %v808_v36, %v418_v26  ;;  %v621_v30 = vpop.f32.mrb[12].mxu0  ;;  %v233_v33 = vpop.f32.mrb[13].mxu1 }
  0xf2   :  { %v480_v31 = vmax.f32 %v464_v27, 0.0  ;;  %v433_v32 = vadd.f32 %v621_v30, %v595_v29  ;;  %v427_v34 = vpop.f32.mrb[13].mxu0 }
  0xf3   :  { %v479_v35 = vmax.f32 %v463_v28, 0.0  ;;  %v428_v37 = vadd.f32 %v427_v34, %v233_v33 }
  0xf4   :  { %496 = vst.msk [vmem:[%s895_s5 + $0x58] sm:$0xff] %vm252_vm2, %v480_v31  ;;  %v466_v38 = vadd.f32 %v808_v36, %v433_v32  ;;  %v598_v40 = vpop.f32.mrb[14].mxu1 }
  0xf5   :  { %495 = vst.msk [vmem:[%s895_s5 + $0x50] sm:$0xff] %vm252_vm2, %v479_v35  ;;  %v465_v39 = vadd.f32 %v808_v36, %v428_v37  ;;  %v624_v41 = vpop.f32.mrb[14].mxu0  ;;  %v243_v44 = vpop.f32.mrb[15].mxu1 }
  0xf6   :  { %v482_v42 = vmax.f32 %v466_v38, 0.0  ;;  %v443_v43 = vadd.f32 %v624_v41, %v598_v40  ;;  %v437_v45 = vpop.f32.mrb[15].mxu0 }
  0xf7   :  { %v481_v46 = vmax.f32 %v465_v39, 0.0  ;;  %v438_v47 = vadd.f32 %v437_v45, %v243_v44 }
  0xf8   :  { %498 = vst.msk [vmem:[%s895_s5 + $0x68] sm:$0xff] %vm252_vm2, %v482_v42  ;;  %v468_v48 = vadd.f32 %v808_v36, %v443_v43 }
  0xf9   :  { %497 = vst.msk [vmem:[%s895_s5 + $0x60] sm:$0xff] %vm252_vm2, %v481_v46  ;;  %v467_v49 = vadd.f32 %v808_v36, %v438_v47 }
  0xfa   :  { %v484_v50 = vmax.f32 %v468_v48, 0.0 }
  0xfb   :  { %v483_v51 = vmax.f32 %v467_v49, 0.0 }
  0xfc   :  { %500 = vst.msk [vmem:[%s895_s5 + $0x78] sm:$0xff] %vm252_vm2, %v484_v50 }
  0xfd   :  { %499 = vst.msk [vmem:[%s895_s5 + $0x70] sm:$0xff] %vm252_vm2, %v483_v51 }

// kernel: strided_block_forward.3
= control target key start
LH: loop header
LB: loop body
LE: loop exit
PB: predicated region body
PF: predicated region fallthrough
CT: control target
= control target key end

     0   :  { %vm405_vm0 = vcmask 1043456   ;;  %vm18_vm1 = vcmask 64512   ;;  %vm212_vm2 = vcmask 31744   ;;  %v1425_v3 = vmov 0.0   ;;  %s2238_s1 = inlined_call_operand.vmem [shape: f32[4,8], index: 1, kind: input, shape index: {}]   ;;  %s2239_s0 = inlined_call_operand.vmem [shape: f32[512,4], index: 0, kind: input, shape index: {}]   ;;  %s2240_s2 = inlined_call_operand.vmem [shape: f32[1,8], index: 2, kind: input, shape index: {}]   ;;  %s2241_s3 = inlined_call_operand.vmem [shape: f32[512,8], index: 3, kind: output, shape index: {}]  }
   0x1   :  { %v1449_v0 = vld [vmem:[%s2238_s1] sm:$0xf]  ;;  %20 = vst.msk [vmem:[#allocation2 + $0x8] sm:$0xff] %vm18_vm1, %v1425_v3  ;;  %19 = vst.msk [vmem:[#allocation2] sm:$0xff] %vm18_vm1, %v1425_v3  ;;  %v148_v4 = vld [vmem:[%s2239_s0 + $0x8] sm:$0xff] }
   0x2   :  { %v1454_v1 = vld [vmem:[%s2239_s0] sm:$0xff]  ;;  %21 = vst.msk [vmem:[#allocation2 + $0x10] sm:$0xff] %vm18_vm1, %v1425_v3  ;;  %22 = vst.msk [vmem:[#allocation2 + $0x18] sm:$0xff] %vm18_vm1, %v1425_v3  ;;  %1324 = vmatprep.subr.msk.mxu0 %vm405_vm0, %v1449_v0  ;;  %1422 = vmatprep.subr.msk.mxu1 %vm405_vm0, %v1449_v0  ;;  %v180_v5 = vld [vmem:[%s2239_s0 + $0x108] sm:$0xff] }
   0x3   :  { %v1459_v2 = vld [vmem:[%s2239_s0 + $0x100] sm:$0xff]  ;;  %23 = vst.msk [vmem:[#allocation2 + $0x20] sm:$0xff] %vm18_vm1, %v1425_v3  ;;  %24 = vst.msk [vmem:[#allocation2 + $0x28] sm:$0xff] %vm18_vm1, %v1425_v3  ;;  %1325 = vmatpush3.msk.msra.mxu0 %vm405_vm0, %v1449_v0  ;;  %1423 = vmatpush3.msk.msra.mxu1 %vm405_vm0, %v1449_v0  ;;  %v149_v6 = vld [vmem:[%s2239_s0 + $0x10] sm:$0xff] }
   0x4   :  { %25 = vst.msk [vmem:[#allocation2 + $0x30] sm:$0xff] %vm18_vm1, %v1425_v3  ;;  %26 = vst.msk [vmem:[#allocation2 + $0x38] sm:$0xff] %vm18_vm1, %v1425_v3  ;;  %v181_v7 = vld [vmem:[%s2239_s0 + $0x110] sm:$0xff]  ;;  %1326 = vmatprep.mubr.msk.f32.mxu0 %vm212_vm2, %v1454_v1  ;;  %1374 = vmatprep.mubr.msk.f32.mxu1 %vm212_vm2, %v1459_v2  ;;  %v150_v8 = vld [vmem:[%s2239_s0 + $0x18] sm:$0xff] }
   0x5   :  { %27 = vst.msk [vmem:[#allocation2 + $0x40] sm:$0xff] %vm18_vm1, %v1425_v3  ;;  %28 = vst.msk [vmem:[#allocation2 + $0x48] sm:$0xff] %vm18_vm1, %v1425_v3  ;;  %1327 = vmatmul.mubr.msk.f32.vlgmr.msra.gmra.mrb[0].mxu0 %vm212_vm2, %v148_v4  ;;  %1375 = vmatmul.mubr.msk.f32.vlgmr.msra.gmra.mrb[0].mxu1 %vm212_vm2, %v180_v5  ;;  %v182_v9 = vld [vmem:[%s2239_s0 + $0x118] sm:$0xff]  ;;  %v151_v10 = vld [vmem:[%s2239_s0 + $0x20] sm:$0xff] }
   0x6   :  { %29 = vst.msk [vmem:[#allocation2 + $0x50] sm:$0xff] %vm18_vm1, %v1425_v3  ;;  %30 = vst.msk [vmem:[#allocation2 + $0x58] sm:$0xff] %vm18_vm1, %v1425_v3  ;;  %1329 = vmatprep.mubr.msk.f32.mxu0 %vm212_vm2, %v149_v6  ;;  %1377 = vmatprep.mubr.msk.f32.mxu1 %vm212_vm2, %v181_v7  ;;  %v183_v11 = vld [vmem:[%s2239_s0 + $0x120] sm:$0xff]  ;;  %v152_v12 = vld [vmem:[%s2239_s0 + $0x28] sm:$0xff] }
   0x7   :  { %31 = vst.msk [vmem:[#allocation2 + $0x60] sm:$0xff] %vm18_vm1, %v1425_v3  ;;  %32 = vst.msk [vmem:[#allocation2 + $0x68] sm:$0xff] %vm18_vm1, %v1425_v3  ;;  %v184_v13 = vld [vmem:[%s2239_s0 + $0x128] sm:$0xff]  ;;  %v153_v14 = vld [vmem:[%s2239_s0 + $0x30] sm:$0xff] }
   0x8   :  { %33 = vst.msk [vmem:[#allocation2 + $0x70] sm:$0xff] %vm18_vm1, %v1425_v3  ;;  %34 = vst.msk [vmem:[#allocation2 + $0x78] sm:$0xff] %vm18_vm1, %v1425_v3  ;;  %v185_v15 = vld [vmem:[%s2239_s0 + $0x130] sm:$0xff]  ;;  %v154_v16 = vld [vmem:[%s2239_s0 + $0x38] sm:$0xff] }
   0x9   :  { %35 = vst.msk [vmem:[#allocation2 + $0x80] sm:$0xff] %vm18_vm1, %v1425_v3  ;;  %36 = vst.msk [vmem:[#allocation2 + $0x88] sm:$0xff] %vm18_vm1, %v1425_v3  ;;  %1330 = vmatmul.mubr.msk.f32.gmra.mrb[2].mxu0 %vm212_vm2, %v150_v8  ;;  %1378 = vmatmul.mubr.msk.f32.gmra.mrb[2].mxu1 %vm212_vm2, %v182_v9  ;;  %v186_v17 = vld [vmem:[%s2239_s0 + $0x138] sm:$0xff]  ;;  %v155_v18 = vld [vmem:[%s2239_s0 + $0x40] sm:$0xff] }
   0xa   :  { %37 = vst.msk [vmem:[#allocation2 + $0x90] sm:$0xff] %vm18_vm1, %v1425_v3  ;;  %38 = vst.msk [vmem:[#allocation2 + $0x98] sm:$0xff] %vm18_vm1, %v1425_v3  ;;  %1332 = vmatprep.mubr.msk.f32.mxu0 %vm212_vm2, %v151_v10  ;;  %1380 = vmatprep.mubr.msk.f32.mxu1 %vm212_vm2, %v183_v11  ;;  %v187_v19 = vld [vmem:[%s2239_s0 + $0x140] sm:$0xff]  ;;  %v156_v20 = vld [vmem:[%s2239_s0 + $0x48] sm:$0xff] }
   0xb   :  { %39 = vst.msk [vmem:[#allocation2 + $0xa0] sm:$0xff] %vm18_vm1, %v1425_v3  ;;  %40 = vst.msk [vmem:[#allocation2 + $0xa8] sm:$0xff] %vm18_vm1, %v1425_v3  ;;  %v188_v21 = vld [vmem:[%s2239_s0 + $0x148] sm:$0xff]  ;;  %v157_v22 = vld [vmem:[%s2239_s0 + $0x50] sm:$0xff] }
   0xc   :  { %41 = vst.msk [vmem:[#allocation2 + $0xb0] sm:$0xff] %vm18_vm1, %v1425_v3  ;;  %42 = vst.msk [vmem:[#allocation2 + $0xb8] sm:$0xff] %vm18_vm1, %v1425_v3  ;;  %v189_v23 = vld [vmem:[%s2239_s0 + $0x150] sm:$0xff]  ;;  %v158_v24 = vld [vmem:[%s2239_s0 + $0x58] sm:$0xff] }
   0xd   :  { %43 = vst.msk [vmem:[#allocation2 + $0xc0] sm:$0xff] %vm18_vm1, %v1425_v3  ;;  %44 = vst.msk [vmem:[#allocation2 + $0xc8] sm:$0xff] %vm18_vm1, %v1425_v3  ;;  %1333 = vmatmul.mubr.msk.f32.gmra.mrb[4].mxu0 %vm212_vm2, %v152_v12  ;;  %1381 = vmatmul.mubr.msk.f32.gmra.mrb[4].mxu1 %vm212_vm2, %v184_v13  ;;  %v190_v25 = vld [vmem:[%s2239_s0 + $0x158] sm:$0xff]  ;;  %v159_v26 = vld [vmem:[%s2239_s0 + $0x60] sm:$0xff] }
   0xe   :  { %45 = vst.msk [vmem:[#allocation2 + $0xd0] sm:$0xff] %vm18_vm1, %v1425_v3  ;;  %46 = vst.msk [vmem:[#allocation2 + $0xd8] sm:$0xff] %vm18_vm1, %v1425_v3  ;;  %1335 = vmatprep.mubr.msk.f32.mxu0 %vm212_vm2, %v153_v14  ;;  %1383 = vmatprep.mubr.msk.f32.mxu1 %vm212_vm2, %v185_v15  ;;  %v191_v27 = vld [vmem:[%s2239_s0 + $0x160] sm:$0xff]  ;;  %v160_v28 = vld [vmem:[%s2239_s0 + $0x68] sm:$0xff] }
   0xf   :  { %47 = vst.msk [vmem:[#allocation2 + $0xe0] sm:$0xff] %vm18_vm1, %v1425_v3  ;;  %48 = vst.msk [vmem:[#allocation2 + $0xe8] sm:$0xff] %vm18_vm1, %v1425_v3  ;;  %v192_v29 = vld [vmem:[%s2239_s0 + $0x168] sm:$0xff]  ;;  %v161_v30 = vld [vmem:[%s2239_s0 + $0x70] sm:$0xff] }
  0x10   :  { %49 = vst.msk [vmem:[#allocation2 + $0xf0] sm:$0xff] %vm18_vm1, %v1425_v3  ;;  %50 = vst.msk [vmem:[#allocation2 + $0xf8] sm:$0xff] %vm18_vm1, %v1425_v3  ;;  %v193_v31 = vld [vmem:[%s2239_s0 + $0x170] sm:$0xff]  ;;  %v162_v32 = vld [vmem:[%s2239_s0 + $0x78] sm:$0xff] }
  0x11   :  { %51 = vst.msk [vmem:[#allocation2 + $0x100] sm:$0xff] %vm18_vm1, %v1425_v3  ;;  %52 = vst.msk [vmem:[#allocation2 + $0x108] sm:$0xff] %vm18_vm1, %v1425_v3  ;;  %1336 = vmatmul.mubr.msk.f32.gmra.mrb[6].mxu0 %vm212_vm2, %v154_v16  ;;  %1384 = vmatmul.mubr.msk.f32.gmra.mrb[6].mxu1 %vm212_vm2, %v186_v17  ;;  %v194_v33 = vld [vmem:[%s2239_s0 + $0x178] sm:$0xff]  ;;  %v163_v34 = vld [vmem:[%s2239_s0 + $0x80] sm:$0xff] }
  0x12   :  { %53 = vst.msk [vmem:[#allocation2 + $0x110] sm:$0xff] %vm18_vm1, %v1425_v3  ;;  %54 = vst.msk [vmem:[#allocation2 + $0x118] sm:$0xff] %vm18_vm1, %v1425_v3  ;;  %1338 = vmatprep.mubr.msk.f32.mxu0 %vm212_vm2, %v155_v18  ;;  %1386 = vmatprep.mubr.msk.f32.mxu1 %vm212_vm2, %v187_v19  ;;  %v195_v35 = vld [vmem:[%s2239_s0 + $0x180] sm:$0xff]  ;;  %v164_v36 = vld [vmem:[%s2239_s0 + $0x88] sm:$0xff] }
  0x13   :  { %55 = vst.msk [vmem:[#allocation2 + $0x120] sm:$0xff] %vm18_vm1, %v1425_v3  ;;  %56 = vst.msk [vmem:[#allocation2 + $0x128] sm:$0xff] %vm18_vm1, %v1425_v3  ;;  %v196_v37 = vld [vmem:[%s2239_s0 + $0x188] sm:$0xff]  ;;  %v165_v38 = vld [vmem:[%s2239_s0 + $0x90] sm:$0xff] }
  0x14   :  { %57 = vst.msk [vmem:[#allocation2 + $0x130] sm:$0xff] %vm18_vm1, %v1425_v3  ;;  %58 = vst.msk [vmem:[#allocation2 + $0x138] sm:$0xff] %vm18_vm1, %v1425_v3  ;;  %v197_v39 = vld [vmem:[%s2239_s0 + $0x190] sm:$0xff]  ;;  %v166_v40 = vld [vmem:[%s2239_s0 + $0x98] sm:$0xff] }
  0x15   :  { %59 = vst.msk [vmem:[#allocation2 + $0x140] sm:$0xff] %vm18_vm1, %v1425_v3  ;;  %60 = vst.msk [vmem:[#allocation2 + $0x148] sm:$0xff] %vm18_vm1, %v1425_v3  ;;  %1339 = vmatmul.mubr.msk.f32.gmra.mrb[8].mxu0 %vm212_vm2, %v156_v20  ;;  %1387 = vmatmul.mubr.msk.f32.gmra.mrb[8].mxu1 %vm212_vm2, %v188_v21  ;;  %v198_v41 = vld [vmem:[%s2239_s0 + $0x198] sm:$0xff]  ;;  %v167_v42 = vld [vmem:[%s2239_s0 + $0xa0] sm:$0xff] }
  0x16   :  { %61 = vst.msk [vmem:[#allocation2 + $0x150] sm:$0xff] %vm18_vm1, %v1425_v3  ;;  %62 = vst.msk [vmem:[#allocation2 + $0x158] sm:$0xff] %vm18_vm1, %v1425_v3  ;;  %1341 = vmatprep.mubr.msk.f32.mxu0 %vm212_vm2, %v157_v22  ;;  %1389 = vmatprep.mubr.msk.f32.mxu1 %vm212_vm2, %v189_v23  ;;  %v199_v43 = vld [vmem:[%s2239_s0 + $0x1a0] sm:$0xff]  ;;  %v168_v44 = vld [vmem:[%s2239_s0 + $0xa8] sm:$0xff] }
  0x17   :  { %63 = vst.msk [vmem:[#allocation2 + $0x160] sm:$0xff] %vm18_vm1, %v1425_v3  ;;  %64 = vst.msk [vmem:[#allocation2 + $0x168] sm:$0xff] %vm18_vm1, %v1425_v3  ;;  %v200_v45 = vld [vmem:[%s2239_s0 + $0x1a8] sm:$0xff]  ;;  %v169_v46 = vld [vmem:[%s2239_s0 + $0xb0] sm:$0xff] }
  0x18   :  { %65 = vst.msk [vmem:[#allocation2 + $0x170] sm:$0xff] %vm18_vm1, %v1425_v3  ;;  %66 = vst.msk [vmem:[#allocation2 + $0x178] sm:$0xff] %vm18_vm1, %v1425_v3  ;;  %v201_v47 = vld [vmem:[%s2239_s0 + $0x1b0] sm:$0xff]  ;;  %v170_v48 = vld [vmem:[%s2239_s0 + $0xb8] sm:$0xff] }
  0x19   :  { %67 = vst.msk [vmem:[#allocation2 + $0x180] sm:$0xff] %vm18_vm1, %v1425_v3  ;;  %68 = vst.msk [vmem:[#allocation2 + $0x188] sm:$0xff] %vm18_vm1, %v1425_v3  ;;  %1342 = vmatmul.mubr.msk.f32.gmra.mrb[10].mxu0 %vm212_vm2, %v158_v24  ;;  %1390 = vmatmul.mubr.msk.f32.gmra.mrb[10].mxu1 %vm212_vm2, %v190_v25  ;;  %v202_v49 = vld [vmem:[%s2239_s0 + $0x1b8] sm:$0xff]  ;;  %v171_v50 = vld [vmem:[%s2239_s0 + $0xc0] sm:$0xff] }
  0x1a   :  { %69 = vst.msk [vmem:[#allocation2 + $0x190] sm:$0xff] %vm18_vm1, %v1425_v3  ;;  %70 = vst.msk [vmem:[#allocation2 + $0x198] sm:$0xff] %vm18_vm1, %v1425_v3  ;;  %1344 = vmatprep.mubr.msk.f32.mxu0 %vm212_vm2, %v159_v26  ;;  %1392 = vmatprep.mubr.msk.f32.mxu1 %vm212_vm2, %v191_v27  ;;  %v203_v51 = vld [vmem:[%s2239_s0 + $0x1c0] sm:$0xff]  ;;  %v172_v52 = vld [vmem:[%s2239_s0 + $0xc8] sm:$0xff] }
  0x1b   :  { %71 = vst.msk [vmem:[#allocation2 + $0x1a0] sm:$0xff] %vm18_vm1, %v1425_v3  ;;  %72 = vst.msk [vmem:[#allocation2 + $0x1a8] sm:$0xff] %vm18_vm1, %v1425_v3  ;;  %v204_v53 = vld [vmem:[%s2239_s0 + $0x1c8] sm:$0xff]  ;;  %v173_v54 = vld [vmem:[%s2239_s0 + $0xd0] sm:$0xff] }
  0x1c   :  { %73 = vst.msk [vmem:[#allocation2 + $0x1b0] sm:$0xff] %vm18_vm1, %v1425_v3  ;;  %74 = vst.msk [vmem:[#allocation2 + $0x1b8] sm:$0xff] %vm18_vm1, %v1425_v3  ;;  %v205_v55 = vld [vmem:[%s2239_s0 + $0x1d0] sm:$0xff]  ;;  %v174_v56 = vld [vmem:[%s2239_s0 + $0xd8] sm:$0xff] }
  0x1d   :  { %75 = vst.msk [vmem:[#allocation2 + $0x1c0] sm:$0xff] %vm18_vm1, %v1425_v3  ;;  %76 = vst.msk [vmem:[#allocation2 + $0x1c8] sm:$0xff] %vm18_vm1, %v1425_v3  ;;  %1345 = vmatmul.mubr.msk.f32.gmra.mrb[12].mxu0 %vm212_vm2, %v160_v28  ;;  %1393 = vmatmul.mubr.msk.f32.gmra.mrb[12].mxu1 %vm212_vm2, %v192_v29  ;;  %v206_v57 = vld [vmem:[%s2239_s0 + $0x1d8] sm:$0xff]  ;;  %v175_v58 = vld [vmem:[%s2239_s0 + $0xe0] sm:$0xff] }
  0x1e   :  { %77 = vst.msk [vmem:[#allocation2 + $0x1d0] sm:$0xff] %vm18_vm1, %v1425_v3  ;;  %78 = vst.msk [vmem:[#allocation2 + $0x1d8] sm:$0xff] %vm18_vm1, %v1425_v3  ;;  %1347 = vmatprep.mubr.msk.f32.mxu0 %vm212_vm2, %v161_v30  ;;  %1395 = vmatprep.mubr.msk.f32.mxu1 %vm212_vm2, %v193_v31  ;;  %v207_v59 = vld [vmem:[%s2239_s0 + $0x1e0] sm:$0xff]  ;;  %v176_v60 = vld [vmem:[%s2239_s0 + $0xe8] sm:$0xff] }
  0x1f   :  { %79 = vst.msk [vmem:[#allocation2 + $0x1e0] sm:$0xff] %vm18_vm1, %v1425_v3  ;;  %80 = vst.msk [vmem:[#allocation2 + $0x1e8] sm:$0xff] %vm18_vm1, %v1425_v3  ;;  %v208_v61 = vld [vmem:[%s2239_s0 + $0x1e8] sm:$0xff]  ;;  %v177_v62 = vld [vmem:[%s2239_s0 + $0xf0] sm:$0xff] }
  0x20   :  { %81 = vst.msk [vmem:[#allocation2 + $0x1f0] sm:$0xff] %vm18_vm1, %v1425_v3  ;;  %82 = vst.msk [vmem:[#allocation2 + $0x1f8] sm:$0xff] %vm18_vm1, %v1425_v3  ;;  %v209_v63 = vld [vmem:[%s2239_s0 + $0x1f0] sm:$0xff]  ;;  %v178_v0 = vld [vmem:[%s2239_s0 + $0xf8] sm:$0xff] }
  0x21   :  { %1348 = vmatmul.mubr.msk.f32.gmra.mrb[14].mxu0 %vm212_vm2, %v162_v32  ;;  %1396 = vmatmul.mubr.msk.f32.gmra.mrb[14].mxu1 %vm212_vm2, %v194_v33  ;;  %v210_v1 = vld [vmem:[%s2239_s0 + $0x1f8] sm:$0xff]  ;;  %v84_v2 = vld [vmem:[#allocation2 + $0x8] sm:$0xff]  ;;  %v83_v4 = vld [vmem:[#allocation2] sm:$0xff] }
  0x22   :  { %1350 = vmatprep.mubr.msk.f32.mxu0 %vm212_vm2, %v163_v34  ;;  %1398 = vmatprep.mubr.msk.f32.mxu1 %vm212_vm2, %v195_v35  ;;  %v116_v3 = vld [vmem:[#allocation2 + $0x108] sm:$0xff]  ;;  %v115_v5 = vld [vmem:[#allocation2 + $0x100] sm:$0xff]  ;;  %v86_v14 = vld [vmem:[#allocation2 + $0x18] sm:$0xff] }
  0x23   :  { %v118_v15 = vld [vmem:[#allocation2 + $0x118] sm:$0xff]  ;;  %v85_v16 = vld [vmem:[#allocation2 + $0x10] sm:$0xff]  ;;  %v88_v26 = vld [vmem:[#allocation2 + $0x28] sm:$0xff] }
  0x24   :  { %v117_v17 = vld [vmem:[#allocation2 + $0x110] sm:$0xff]  ;;  %v120_v27 = vld [vmem:[#allocation2 + $0x128] sm:$0xff]  ;;  %v87_v28 = vld [vmem:[#allocation2 + $0x20] sm:$0xff] }
  0x25   :  { %1351 = vmatmul.mubr.msk.f32.gmra.mrb[16].mxu0 %vm212_vm2, %v164_v36  ;;  %1399 = vmatmul.mubr.msk.f32.gmra.mrb[16].mxu1 %vm212_vm2, %v196_v37  ;;  %v119_v29 = vld [vmem:[#allocation2 + $0x120] sm:$0xff]  ;;  %v90_v37 = vld [vmem:[#allocation2 + $0x38] sm:$0xff] }
  0x26   :  { %1353 = vmatprep.mubr.msk.f32.mxu0 %vm212_vm2, %v165_v38  ;;  %1401 = vmatprep.mubr.msk.f32.mxu1 %vm212_vm2, %v197_v39  ;;  %v1858_v30 = vld [vmem:[%s2240_s2] ss:$0 sm:$0xff]  ;;  %v122_v38 = vld [vmem:[#allocation2 + $0x138] sm:$0xff] }
  0x29   :  { %1354 = vmatmul.mubr.msk.f32.gmra.mrb[18].mxu0 %vm212_vm2, %v166_v40  ;;  %1402 = vmatmul.mubr.msk.f32.gmra.mrb[18].mxu1 %vm212_vm2, %v198_v41 }
  0x2a   :  { %1356 = vmatprep.mubr.msk.f32.mxu0 %vm212_vm2, %v167_v42  ;;  %1404 = vmatprep.mubr.msk.f32.mxu1 %vm212_vm2, %v199_v43  ;;  %v89_v43 = vld [vmem:[#allocation2 + $0x30] sm:$0xff] }
  0x2d   :  { %1357 = vmatmul.mubr.msk.f32.gmra.mrb[20].mxu0 %vm212_vm2, %v168_v44  ;;  %1405 = vmatmul.mubr.msk.f32.gmra.mrb[20].mxu1 %vm212_vm2, %v200_v45 }
  0x2e   :  { %1359 = vmatprep.mubr.msk.f32.mxu0 %vm212_vm2, %v169_v46  ;;  %1407 = vmatprep.mubr.msk.f32.mxu1 %vm212_vm2, %v201_v47 }
  0x31   :  { %1360 = vmatmul.mubr.msk.f32.gmra.mrb[22].mxu0 %vm212_vm2, %v170_v48  ;;  %1408 = vmatmul.mubr.msk.f32.gmra.mrb[22].mxu1 %vm212_vm2, %v202_v49  ;;  %v121_v48 = vld [vmem:[#allocation2 + $0x130] sm:$0xff] }
  0x32   :  { %1362 = vmatprep.mubr.msk.f32.mxu0 %vm212_vm2, %v171_v50  ;;  %1410 = vmatprep.mubr.msk.f32.mxu1 %vm212_vm2, %v203_v51 }
  0x35   :  { %1363 = vmatmul.mubr.msk.f32.gmra.mrb[24].mxu0 %vm212_vm2, %v172_v52  ;;  %1411 = vmatmul.mubr.msk.f32.gmra.mrb[24].mxu1 %vm212_vm2, %v204_v53 }
  0x36   :  { %1365 = vmatprep.mubr.msk.f32.mxu0 %vm212_vm2, %v173_v54  ;;  %1413 = vmatprep.mubr.msk.f32.mxu1 %vm212_vm2, %v205_v55 }
  0x39   :  { %1366 = vmatmul.mubr.msk.f32.gmra.mrb[26].mxu0 %vm212_vm2, %v174_v56  ;;  %1414 = vmatmul.mubr.msk.f32.gmra.mrb[26].mxu1 %vm212_vm2, %v206_v57 }
  0x3a   :  { %1368 = vmatprep.mubr.msk.f32.mxu0 %vm212_vm2, %v175_v58  ;;  %1416 = vmatprep.mubr.msk.f32.mxu1 %vm212_vm2, %v207_v59  ;;  %v92_v59 = vld [vmem:[#allocation2 + $0x48] sm:$0xff] }
  0x3d   :  { %1369 = vmatmul.mubr.msk.f32.gmra.mrb[28].mxu0 %vm212_vm2, %v176_v60  ;;  %1417 = vmatmul.mubr.msk.f32.gmra.mrb[28].mxu1 %vm212_vm2, %v208_v61  ;;  %v124_v60 = vld [vmem:[#allocation2 + $0x148] sm:$0xff] }
  0x3e   :  { %1371 = vmatprep.mubr.msk.f32.mxu0 %vm212_vm2, %v177_v62  ;;  %1419 = vmatprep.mubr.msk.f32.mxu1 %vm212_vm2, %v209_v63 }
  0x41   :  { %1372 = vmatmul.mubr.msk.f32.gmra.mrb[30].mxu0 %vm212_vm2, %v178_v0  ;;  %1420 = vmatmul.mubr.msk.f32.gmra.mrb[30].mxu1 %vm212_vm2, %v210_v1 }
  0xd8   :  { %v1328_v6 = vpop.f32.mrb[0].mxu0  ;;  %v1376_v7 = vpop.f32.mrb[0].mxu1 }
  0xd9   :  { %v795_v8 = vadd.f32 %v1328_v6, %v84_v2  ;;  %v827_v9 = vadd.f32 %v1376_v7, %v116_v3  ;;  %v475_v10 = vpop.f32.mrb[1].mxu0  ;;  %v635_v11 = vpop.f32.mrb[1].mxu1  ;;  %v91_v3 = vld [vmem:[#allocation2 + $0x40] sm:$0xff] }
  0xda   :  { %v794_v12 = vadd.f32 %v475_v10, %v83_v4  ;;  %v826_v13 = vadd.f32 %v635_v11, %v115_v5 }
  0xdb   :  { %860 = vst.msk [vmem:[#allocation2 + $0x8] sm:$0xff] %vm18_vm1, %v795_v8  ;;  %892 = vst.msk [vmem:[#allocation2 + $0x108] sm:$0xff] %vm18_vm1, %v827_v9  ;;  %v123_v8 = vld [vmem:[#allocation2 + $0x140] sm:$0xff] }
  0xdc   :  { %859 = vst.msk [vmem:[#allocation2] sm:$0xff] %vm18_vm1, %v794_v12  ;;  %891 = vst.msk [vmem:[#allocation2 + $0x100] sm:$0xff] %vm18_vm1, %v826_v13  ;;  %v1331_v18 = vpop.f32.mrb[2].mxu0  ;;  %v1379_v19 = vpop.f32.mrb[2].mxu1 }
  0xdd   :  { %v797_v20 = vadd.f32 %v1331_v18, %v86_v14  ;;  %v829_v21 = vadd.f32 %v1379_v19, %v118_v15  ;;  %v485_v22 = vpop.f32.mrb[3].mxu0  ;;  %v645_v23 = vpop.f32.mrb[3].mxu1  ;;  %v94_v19 = vld [vmem:[#allocation2 + $0x58] sm:$0xff] }
  0xde   :  { %v796_v24 = vadd.f32 %v485_v22, %v85_v16  ;;  %v828_v25 = vadd.f32 %v645_v23, %v117_v17 }
  0xdf   :  { %862 = vst.msk [vmem:[#allocation2 + $0x18] sm:$0xff] %vm18_vm1, %v797_v20  ;;  %894 = vst.msk [vmem:[#allocation2 + $0x118] sm:$0xff] %vm18_vm1, %v829_v21  ;;  %v126_v20 = vld [vmem:[#allocation2 + $0x158] sm:$0xff] }
  0xe0   :  { %861 = vst.msk [vmem:[#allocation2 + $0x10] sm:$0xff] %vm18_vm1, %v796_v24  ;;  %893 = vst.msk [vmem:[#allocation2 + $0x110] sm:$0xff] %vm18_vm1, %v828_v25  ;;  %v1334_v31 = vpop.f32.mrb[4].mxu0  ;;  %v1382_v32 = vpop.f32.mrb[4].mxu1 }
  0xe1   :  { %v799_v33 = vadd.f32 %v1334_v31, %v88_v26  ;;  %v831_v34 = vadd.f32 %v1382_v32, %v120_v27  ;;  %v495_v35 = vpop.f32.mrb[5].mxu0  ;;  %v655_v36 = vpop.f32.mrb[5].mxu1  ;;  %v93_v27 = vld [vmem:[#allocation2 + $0x50] sm:$0xff] }
  0xe2   :  { %v927_v39 = vld [vmem:[#allocation2 + $0x8] sm:$0xff]  ;;  %v798_v41 = vadd.f32 %v495_v35, %v87_v28  ;;  %v830_v42 = vadd.f32 %v655_v36, %v119_v29 }
  0xe3   :  { %v959_v40 = vld [vmem:[#allocation2 + $0x108] sm:$0xff]  ;;  %v998_v44 = vadd.f32 %v1858_v30, %v927_v39  ;;  %v926_v46 = vld [vmem:[#allocation2] sm:$0xff]  ;;  %864 = vst.msk [vmem:[#allocation2 + $0x28] sm:$0xff] %vm18_vm1, %v799_v33  ;;  %896 = vst.msk [vmem:[#allocation2 + $0x128] sm:$0xff] %vm18_vm1, %v831_v34 }
  0xe4   :  { %v1030_v45 = vadd.f32 %v1858_v30, %v959_v40  ;;  %v958_v47 = vld [vmem:[#allocation2 + $0x100] sm:$0xff]  ;;  %v997_v49 = vadd.f32 %v1858_v30, %v926_v46  ;;  %863 = vst.msk [vmem:[#allocation2 + $0x20] sm:$0xff] %vm18_vm1, %v798_v41  ;;  %895 = vst.msk [vmem:[#allocation2 + $0x120] sm:$0xff] %vm18_vm1, %v830_v42  ;;  %v1337_v51 = vpop.f32.mrb[6].mxu0  ;;  %v1385_v52 = vpop.f32.mrb[6].mxu1  ;;  %v125_v33 = vld [vmem:[#allocation2 + $0x150] sm:$0xff] }
  0xe5   :  { %v1029_v50 = vadd.f32 %v1858_v30, %v958_v47  ;;  %v1062_v53 = vmax.f32 %v998_v44, 0.0  ;;  %v801_v55 = vadd.f32 %v1337_v51, %v90_v37  ;;  %v833_v56 = vadd.f32 %v1385_v52, %v122_v38  ;;  %v505_v57 = vpop.f32.mrb[7].mxu0  ;;  %v665_v58 = vpop.f32.mrb[7].mxu1  ;;  %v96_v44 = vld [vmem:[#allocation2 + $0x68] sm:$0xff]  ;;  %v95_v52 = vld [vmem:[#allocation2 + $0x60] sm:$0xff] }
  0xe6   :  { %v1094_v54 = vmax.f32 %v1030_v45, 0.0  ;;  %v1061_v61 = vmax.f32 %v997_v49, 0.0  ;;  %v929_v63 = vld [vmem:[#allocation2 + $0x18] sm:$0xff]  ;;  %v800_v1 = vadd.f32 %v505_v57, %v89_v43  ;;  %v832_v2 = vadd.f32 %v665_v58, %v121_v48  ;;  %v128_v45 = vld [vmem:[#allocation2 + $0x168] sm:$0xff]  ;;  %v127_v57 = vld [vmem:[#allocation2 + $0x160] sm:$0xff] }
  0xe7   :  { %v1093_v62 = vmax.f32 %v1029_v50, 0.0  ;;  %v961_v0 = vld [vmem:[#allocation2 + $0x118] sm:$0xff]  ;;  %1126 = vst.msk [vmem:[%s2241_s3 + $0x8] sm:$0xff] %vm18_vm1, %v1062_v53  ;;  %v1000_v4 = vadd.f32 %v1858_v30, %v929_v63  ;;  %v928_v6 = vld [vmem:[#allocation2 + $0x10] sm:$0xff]  ;;  %866 = vst.msk [vmem:[#allocation2 + $0x38] sm:$0xff] %vm18_vm1, %v801_v55 }
  0xe8   :  { %1158 = vst.msk [vmem:[%s2241_s3 + $0x108] sm:$0xff] %vm18_vm1, %v1094_v54  ;;  %v1032_v5 = vadd.f32 %v1858_v30, %v961_v0  ;;  %v960_v7 = vld [vmem:[#allocation2 + $0x110] sm:$0xff]  ;;  %898 = vst.msk [vmem:[#allocation2 + $0x138] sm:$0xff] %vm18_vm1, %v833_v56  ;;  %v999_v9 = vadd.f32 %v1858_v30, %v928_v6  ;;  %v1340_v11 = vpop.f32.mrb[8].mxu0  ;;  %v1388_v12 = vpop.f32.mrb[8].mxu1 }
  0xe9   :  { %1125 = vst.msk [vmem:[%s2241_s3] sm:$0xff] %vm18_vm1, %v1061_v61  ;;  %1157 = vst.msk [vmem:[%s2241_s3 + $0x100] sm:$0xff] %vm18_vm1, %v1093_v62  ;;  %v1031_v10 = vadd.f32 %v1858_v30, %v960_v7  ;;  %v1064_v13 = vmax.f32 %v1000_v4, 0.0  ;;  %v803_v15 = vadd.f32 %v1340_v11, %v92_v59  ;;  %v835_v16 = vadd.f32 %v1388_v12, %v124_v60  ;;  %v515_v17 = vpop.f32.mrb[9].mxu0  ;;  %v675_v18 = vpop.f32.mrb[9].mxu1  ;;  %v98_v4 = vld [vmem:[#allocation2 + $0x78] sm:$0xff] }
  0xea   :  { %865 = vst.msk [vmem:[#allocation2 + $0x30] sm:$0xff] %vm18_vm1, %v800_v1  ;;  %897 = vst.msk [vmem:[#allocation2 + $0x130] sm:$0xff] %vm18_vm1, %v832_v2  ;;  %v1096_v14 = vmax.f32 %v1032_v5, 0.0  ;;  %v1063_v21 = vmax.f32 %v999_v9, 0.0  ;;  %v931_v23 = vld [vmem:[#allocation2 + $0x28] sm:$0xff]  ;;  %v802_v25 = vadd.f32 %v515_v17, %v91_v3  ;;  %v834_v26 = vadd.f32 %v675_v18, %v123_v8  ;;  %v130_v5 = vld [vmem:[#allocation2 + $0x178] sm:$0xff] }
  0xeb   :  { %v1095_v22 = vmax.f32 %v1031_v10, 0.0  ;;  %v963_v24 = vld [vmem:[#allocation2 + $0x128] sm:$0xff]  ;;  %1128 = vst.msk [vmem:[%s2241_s3 + $0x18] sm:$0xff] %vm18_vm1, %v1064_v13  ;;  %v1002_v28 = vadd.f32 %v1858_v30, %v931_v23  ;;  %v930_v31 = vld [vmem:[#allocation2 + $0x20] sm:$0xff]  ;;  %868 = vst.msk [vmem:[#allocation2 + $0x48] sm:$0xff] %vm18_vm1, %v803_v15 }
  0xec   :  { %1160 = vst.msk [vmem:[%s2241_s3 + $0x118] sm:$0xff] %vm18_vm1, %v1096_v14  ;;  %v1034_v29 = vadd.f32 %v1858_v30, %v963_v24  ;;  %v962_v32 = vld [vmem:[#allocation2 + $0x120] sm:$0xff]  ;;  %900 = vst.msk [vmem:[#allocation2 + $0x148] sm:$0xff] %vm18_vm1, %v835_v16  ;;  %v1001_v34 = vadd.f32 %v1858_v30, %v930_v31  ;;  %v1343_v36 = vpop.f32.mrb[10].mxu0  ;;  %v1391_v37 = vpop.f32.mrb[10].mxu1  ;;  %v97_v12 = vld [vmem:[#allocation2 + $0x70] sm:$0xff] }
  0xed   :  { %1127 = vst.msk [vmem:[%s2241_s3 + $0x10] sm:$0xff] %vm18_vm1, %v1063_v21  ;;  %1159 = vst.msk [vmem:[%s2241_s3 + $0x110] sm:$0xff] %vm18_vm1, %v1095_v22  ;;  %v1033_v35 = vadd.f32 %v1858_v30, %v962_v32  ;;  %v1066_v38 = vmax.f32 %v1002_v28, 0.0  ;;  %v805_v40 = vadd.f32 %v1343_v36, %v94_v19  ;;  %v837_v41 = vadd.f32 %v1391_v37, %v126_v20  ;;  %v525_v42 = vpop.f32.mrb[11].mxu0  ;;  %v685_v43 = vpop.f32.mrb[11].mxu1  ;;  %v129_v17 = vld [vmem:[#allocation2 + $0x170] sm:$0xff] }
  0xee   :  { %867 = vst.msk [vmem:[#allocation2 + $0x40] sm:$0xff] %vm18_vm1, %v802_v25  ;;  %899 = vst.msk [vmem:[#allocation2 + $0x140] sm:$0xff] %vm18_vm1, %v834_v26  ;;  %v1098_v39 = vmax.f32 %v1034_v29, 0.0  ;;  %v1065_v46 = vmax.f32 %v1001_v34, 0.0  ;;  %v933_v48 = vld [vmem:[#allocation2 + $0x38] sm:$0xff]  ;;  %v804_v50 = vadd.f32 %v525_v42, %v93_v27  ;;  %v836_v51 = vadd.f32 %v685_v43, %v125_v33  ;;  %v100_v28 = vld [vmem:[#allocation2 + $0x88] sm:$0xff] }
  0xef   :  { %v1097_v47 = vmax.f32 %v1033_v35, 0.0  ;;  %v965_v49 = vld [vmem:[#allocation2 + $0x138] sm:$0xff]  ;;  %1130 = vst.msk [vmem:[%s2241_s3 + $0x28] sm:$0xff] %vm18_vm1, %v1066_v38  ;;  %v1004_v53 = vadd.f32 %v1858_v30, %v933_v48  ;;  %870 = vst.msk [vmem:[#allocation2 + $0x58] sm:$0xff] %vm18_vm1, %v805_v40  ;;  %v132_v29 = vld [vmem:[#allocation2 + $0x188] sm:$0xff] }
  0xf0   :  { %1162 = vst.msk [vmem:[%s2241_s3 + $0x128] sm:$0xff] %vm18_vm1, %v1098_v39  ;;  %v1036_v54 = vadd.f32 %v1858_v30, %v965_v49  ;;  %902 = vst.msk [vmem:[#allocation2 + $0x158] sm:$0xff] %vm18_vm1, %v837_v41  ;;  %v1346_v60 = vpop.f32.mrb[12].mxu0  ;;  %v1394_v61 = vpop.f32.mrb[12].mxu1  ;;  %v99_v37 = vld [vmem:[#allocation2 + $0x80] sm:$0xff] }
  0xf1   :  { %v932_v55 = vld [vmem:[#allocation2 + $0x30] sm:$0xff]  ;;  %1129 = vst.msk [vmem:[%s2241_s3 + $0x20] sm:$0xff] %vm18_vm1, %v1065_v46  ;;  %1161 = vst.msk [vmem:[%s2241_s3 + $0x120] sm:$0xff] %vm18_vm1, %v1097_v47  ;;  %v1068_v62 = vmax.f32 %v1004_v53, 0.0  ;;  %v807_v0 = vadd.f32 %v1346_v60, %v96_v44  ;;  %v839_v1 = vadd.f32 %v1394_v61, %v128_v45  ;;  %v535_v2 = vpop.f32.mrb[13].mxu0  ;;  %v695_v3 = vpop.f32.mrb[13].mxu1 }
  0xf2   :  { %v964_v56 = vld [vmem:[#allocation2 + $0x130] sm:$0xff]  ;;  %v1003_v58 = vadd.f32 %v1858_v30, %v932_v55  ;;  %869 = vst.msk [vmem:[#allocation2 + $0x50] sm:$0xff] %vm18_vm1, %v804_v50  ;;  %901 = vst.msk [vmem:[#allocation2 + $0x150] sm:$0xff] %vm18_vm1, %v836_v51  ;;  %v1100_v63 = vmax.f32 %v1036_v54, 0.0  ;;  %v935_v8 = vld [vmem:[#allocation2 + $0x48] sm:$0xff]  ;;  %v806_v10 = vadd.f32 %v535_v2, %v95_v52  ;;  %v838_v11 = vadd.f32 %v695_v3, %v127_v57 }
  0xf3   :  { %v1035_v59 = vadd.f32 %v1858_v30, %v964_v56  ;;  %v967_v9 = vld [vmem:[#allocation2 + $0x148] sm:$0xff]  ;;  %1132 = vst.msk [vmem:[%s2241_s3 + $0x38] sm:$0xff] %vm18_vm1, %v1068_v62  ;;  %v1006_v13 = vadd.f32 %v1858_v30, %v935_v8  ;;  %872 = vst.msk [vmem:[#allocation2 + $0x68] sm:$0xff] %vm18_vm1, %v807_v0  ;;  %v131_v42 = vld [vmem:[#allocation2 + $0x180] sm:$0xff] }
  0xf4   :  { %v1067_v6 = vmax.f32 %v1003_v58, 0.0  ;;  %1164 = vst.msk [vmem:[%s2241_s3 + $0x138] sm:$0xff] %vm18_vm1, %v1100_v63  ;;  %v1038_v14 = vadd.f32 %v1858_v30, %v967_v9  ;;  %904 = vst.msk [vmem:[#allocation2 + $0x168] sm:$0xff] %vm18_vm1, %v839_v1  ;;  %v1349_v20 = vpop.f32.mrb[14].mxu0  ;;  %v1397_v21 = vpop.f32.mrb[14].mxu1  ;;  %v102_v53 = vld [vmem:[#allocation2 + $0x98] sm:$0xff] }
  0xf5   :  { %v1099_v7 = vmax.f32 %v1035_v59, 0.0  ;;  %v934_v15 = vld [vmem:[#allocation2 + $0x40] sm:$0xff]  ;;  %871 = vst.msk [vmem:[#allocation2 + $0x60] sm:$0xff] %vm18_vm1, %v806_v10  ;;  %903 = vst.msk [vmem:[#allocation2 + $0x160] sm:$0xff] %vm18_vm1, %v838_v11  ;;  %v1070_v22 = vmax.f32 %v1006_v13, 0.0  ;;  %v809_v24 = vadd.f32 %v1349_v20, %v98_v4  ;;  %v841_v25 = vadd.f32 %v1397_v21, %v130_v5  ;;  %v545_v26 = vpop.f32.mrb[15].mxu0 }
  0xf6   :  { %v966_v16 = vld [vmem:[#allocation2 + $0x140] sm:$0xff]  ;;  %1131 = vst.msk [vmem:[%s2241_s3 + $0x30] sm:$0xff] %vm18_vm1, %v1067_v6  ;;  %v1005_v18 = vadd.f32 %v1858_v30, %v934_v15  ;;  %v1102_v23 = vmax.f32 %v1038_v14, 0.0  ;;  %v705_v27 = vpop.f32.mrb[15].mxu1  ;;  %v937_v33 = vld [vmem:[#allocation2 + $0x58] sm:$0xff]  ;;  %v808_v35 = vadd.f32 %v545_v26, %v97_v12  ;;  %v101_v61 = vld [vmem:[#allocation2 + $0x90] sm:$0xff] }
  0xf7   :  { %1163 = vst.msk [vmem:[%s2241_s3 + $0x130] sm:$0xff] %vm18_vm1, %v1099_v7  ;;  %v1037_v19 = vadd.f32 %v1858_v30, %v966_v16  ;;  %v969_v34 = vld [vmem:[#allocation2 + $0x158] sm:$0xff]  ;;  %v840_v36 = vadd.f32 %v705_v27, %v129_v17  ;;  %1134 = vst.msk [vmem:[%s2241_s3 + $0x48] sm:$0xff] %vm18_vm1, %v1070_v22  ;;  %v1008_v38 = vadd.f32 %v1858_v30, %v937_v33  ;;  %v133_v2 = vld [vmem:[#allocation2 + $0x190] sm:$0xff] }
  0xf8   :  { %v1069_v31 = vmax.f32 %v1005_v18, 0.0  ;;  %1166 = vst.msk [vmem:[%s2241_s3 + $0x148] sm:$0xff] %vm18_vm1, %v1102_v23  ;;  %v1040_v39 = vadd.f32 %v1858_v30, %v969_v34  ;;  %874 = vst.msk [vmem:[#allocation2 + $0x78] sm:$0xff] %vm18_vm1, %v809_v24  ;;  %v1352_v45 = vpop.f32.mrb[16].mxu0  ;;  %v1400_v46 = vpop.f32.mrb[16].mxu1  ;;  %v134_v54 = vld [vmem:[#allocation2 + $0x198] sm:$0xff] }
  0xf9   :  { %v1101_v32 = vmax.f32 %v1037_v19, 0.0  ;;  %v936_v40 = vld [vmem:[#allocation2 + $0x50] sm:$0xff]  ;;  %906 = vst.msk [vmem:[#allocation2 + $0x178] sm:$0xff] %vm18_vm1, %v841_v25  ;;  %873 = vst.msk [vmem:[#allocation2 + $0x70] sm:$0xff] %vm18_vm1, %v808_v35  ;;  %v1072_v47 = vmax.f32 %v1008_v38, 0.0  ;;  %v811_v49 = vadd.f32 %v1352_v45, %v100_v28  ;;  %v843_v50 = vadd.f32 %v1400_v46, %v132_v29  ;;  %v555_v51 = vpop.f32.mrb[17].mxu0 }
  0xfa   :  { %v968_v41 = vld [vmem:[#allocation2 + $0x150] sm:$0xff]  ;;  %1133 = vst.msk [vmem:[%s2241_s3 + $0x40] sm:$0xff] %vm18_vm1, %v1069_v31  ;;  %v1007_v43 = vadd.f32 %v1858_v30, %v936_v40  ;;  %905 = vst.msk [vmem:[#allocation2 + $0x170] sm:$0xff] %vm18_vm1, %v840_v36  ;;  %v1104_v48 = vmax.f32 %v1040_v39, 0.0  ;;  %v715_v52 = vpop.f32.mrb[17].mxu1  ;;  %v939_v57 = vld [vmem:[#allocation2 + $0x68] sm:$0xff]  ;;  %v810_v59 = vadd.f32 %v555_v51, %v99_v37 }
  0xfb   :  { %1165 = vst.msk [vmem:[%s2241_s3 + $0x140] sm:$0xff] %vm18_vm1, %v1101_v32  ;;  %v1039_v44 = vadd.f32 %v1858_v30, %v968_v41  ;;  %v971_v58 = vld [vmem:[#allocation2 + $0x168] sm:$0xff]  ;;  %v842_v60 = vadd.f32 %v715_v52, %v131_v42  ;;  %1136 = vst.msk [vmem:[%s2241_s3 + $0x58] sm:$0xff] %vm18_vm1, %v1072_v47  ;;  %v1010_v62 = vadd.f32 %v1858_v30, %v939_v57  ;;  %v103_v21 = vld [vmem:[#allocation2 + $0xa0] sm:$0xff] }
  0xfc   :  { %v1071_v55 = vmax.f32 %v1007_v43, 0.0  ;;  %1168 = vst.msk [vmem:[%s2241_s3 + $0x158] sm:$0xff] %vm18_vm1, %v1104_v48  ;;  %v1042_v63 = vadd.f32 %v1858_v30, %v971_v58  ;;  %v938_v0 = vld [vmem:[#allocation2 + $0x60] sm:$0xff]  ;;  %876 = vst.msk [vmem:[#allocation2 + $0x88] sm:$0xff] %vm18_vm1, %v811_v49  ;;  %v1355_v5 = vpop.f32.mrb[18].mxu0  ;;  %v1403_v6 = vpop.f32.mrb[18].mxu1 }
  0xfd   :  { %v1103_v56 = vmax.f32 %v1039_v44, 0.0  ;;  %v970_v1 = vld [vmem:[#allocation2 + $0x160] sm:$0xff]  ;;  %908 = vst.msk [vmem:[#allocation2 + $0x188] sm:$0xff] %vm18_vm1, %v843_v50  ;;  %v1009_v3 = vadd.f32 %v1858_v30, %v938_v0  ;;  %875 = vst.msk [vmem:[#allocation2 + $0x80] sm:$0xff] %vm18_vm1, %v810_v59  ;;  %v1074_v7 = vmax.f32 %v1010_v62, 0.0  ;;  %v813_v9 = vadd.f32 %v1355_v5, %v102_v53  ;;  %v565_v11 = vpop.f32.mrb[19].mxu0 }
  0xfe   :  { %1135 = vst.msk [vmem:[%s2241_s3 + $0x50] sm:$0xff] %vm18_vm1, %v1071_v55  ;;  %v1041_v4 = vadd.f32 %v1858_v30, %v970_v1  ;;  %907 = vst.msk [vmem:[#allocation2 + $0x180] sm:$0xff] %vm18_vm1, %v842_v60  ;;  %v1106_v8 = vmax.f32 %v1042_v63, 0.0  ;;  %v845_v10 = vadd.f32 %v1403_v6, %v134_v54  ;;  %v725_v12 = vpop.f32.mrb[19].mxu1  ;;  %v104_v13 = vld [vmem:[#allocation2 + $0xa8] sm:$0xff]  ;;  %v812_v19 = vadd.f32 %v565_v11, %v101_v61  ;;  %v135_v26 = vld [vmem:[#allocation2 + $0x1a0] sm:$0xff] }
  0xff   :  { %1167 = vst.msk [vmem:[%s2241_s3 + $0x150] sm:$0xff] %vm18_vm1, %v1103_v56  ;;  %v136_v14 = vld [vmem:[#allocation2 + $0x1a8] sm:$0xff]  ;;  %v1073_v15 = vmax.f32 %v1009_v3, 0.0  ;;  %v941_v17 = vld [vmem:[#allocation2 + $0x78] sm:$0xff]  ;;  %v844_v20 = vadd.f32 %v725_v12, %v133_v2  ;;  %1138 = vst.msk [vmem:[%s2241_s3 + $0x68] sm:$0xff] %vm18_vm1, %v1074_v7 }
 0x100   :  { %v1105_v16 = vmax.f32 %v1041_v4, 0.0  ;;  %v973_v18 = vld [vmem:[#allocation2 + $0x178] sm:$0xff]  ;;  %1170 = vst.msk [vmem:[%s2241_s3 + $0x168] sm:$0xff] %vm18_vm1, %v1106_v8  ;;  %v1012_v22 = vadd.f32 %v1858_v30, %v941_v17  ;;  %v940_v24 = vld [vmem:[#allocation2 + $0x70] sm:$0xff]  ;;  %878 = vst.msk [vmem:[#allocation2 + $0x98] sm:$0xff] %vm18_vm1, %v813_v9  ;;  %v1358_v29 = vpop.f32.mrb[20].mxu0 }
 0x101   :  { %v1044_v23 = vadd.f32 %v1858_v30, %v973_v18  ;;  %v972_v25 = vld [vmem:[#allocation2 + $0x170] sm:$0xff]  ;;  %910 = vst.msk [vmem:[#allocation2 + $0x198] sm:$0xff] %vm18_vm1, %v845_v10  ;;  %1137 = vst.msk [vmem:[%s2241_s3 + $0x60] sm:$0xff] %vm18_vm1, %v1073_v15  ;;  %v1011_v27 = vadd.f32 %v1858_v30, %v940_v24  ;;  %v1406_v31 = vpop.f32.mrb[20].mxu1  ;;  %v815_v34 = vadd.f32 %v1358_v29, %v104_v13  ;;  %v575_v36 = vpop.f32.mrb[21].mxu0  ;;  %v106_v38 = vld [vmem:[#allocation2 + $0xb8] sm:$0xff] }
 0x102   :  { %1169 = vst.msk [vmem:[%s2241_s3 + $0x160] sm:$0xff] %vm18_vm1, %v1105_v16  ;;  %v1043_v28 = vadd.f32 %v1858_v30, %v972_v25  ;;  %877 = vst.msk [vmem:[#allocation2 + $0x90] sm:$0xff] %vm18_vm1, %v812_v19  ;;  %v1076_v32 = vmax.f32 %v1012_v22, 0.0  ;;  %v847_v35 = vadd.f32 %v1406_v31, %v136_v14  ;;  %v735_v37 = vpop.f32.mrb[21].mxu1  ;;  %v138_v39 = vld [vmem:[#allocation2 + $0x1b8] sm:$0xff]  ;;  %v814_v44 = vadd.f32 %v575_v36, %v103_v21  ;;  %v105_v46 = vld [vmem:[#allocation2 + $0xb0] sm:$0xff] }
 0x103   :  { %909 = vst.msk [vmem:[#allocation2 + $0x190] sm:$0xff] %vm18_vm1, %v844_v20  ;;  %v1108_v33 = vmax.f32 %v1044_v23, 0.0  ;;  %v1075_v40 = vmax.f32 %v1011_v27, 0.0  ;;  %v943_v42 = vld [vmem:[#allocation2 + $0x88] sm:$0xff]  ;;  %v846_v45 = vadd.f32 %v735_v37, %v135_v26  ;;  %880 = vst.msk [vmem:[#allocation2 + $0xa8] sm:$0xff] %vm18_vm1, %v815_v34  ;;  %v137_v51 = vld [vmem:[#allocation2 + $0x1b0] sm:$0xff] }
 0x104   :  { %v1107_v41 = vmax.f32 %v1043_v28, 0.0  ;;  %v975_v43 = vld [vmem:[#allocation2 + $0x188] sm:$0xff]  ;;  %1140 = vst.msk [vmem:[%s2241_s3 + $0x78] sm:$0xff] %vm18_vm1, %v1076_v32  ;;  %v1014_v47 = vadd.f32 %v1858_v30, %v943_v42  ;;  %v942_v49 = vld [vmem:[#allocation2 + $0x80] sm:$0xff]  ;;  %912 = vst.msk [vmem:[#allocation2 + $0x1a8] sm:$0xff] %vm18_vm1, %v847_v35  ;;  %v1361_v54 = vpop.f32.mrb[22].mxu0 }
 0x105   :  { %1172 = vst.msk [vmem:[%s2241_s3 + $0x178] sm:$0xff] %vm18_vm1, %v1108_v33  ;;  %v1046_v48 = vadd.f32 %v1858_v30, %v975_v43  ;;  %v974_v50 = vld [vmem:[#allocation2 + $0x180] sm:$0xff]  ;;  %1139 = vst.msk [vmem:[%s2241_s3 + $0x70] sm:$0xff] %vm18_vm1, %v1075_v40  ;;  %v1013_v52 = vadd.f32 %v1858_v30, %v942_v49  ;;  %v1409_v55 = vpop.f32.mrb[22].mxu1  ;;  %v817_v58 = vadd.f32 %v1361_v54, %v106_v38  ;;  %v585_v60 = vpop.f32.mrb[23].mxu0  ;;  %v108_v62 = vld [vmem:[#allocation2 + $0xc8] sm:$0xff] }
 0x106   :  { %1171 = vst.msk [vmem:[%s2241_s3 + $0x170] sm:$0xff] %vm18_vm1, %v1107_v41  ;;  %v1045_v53 = vadd.f32 %v1858_v30, %v974_v50  ;;  %879 = vst.msk [vmem:[#allocation2 + $0xa0] sm:$0xff] %vm18_vm1, %v814_v44  ;;  %v1078_v56 = vmax.f32 %v1014_v47, 0.0  ;;  %v849_v59 = vadd.f32 %v1409_v55, %v138_v39  ;;  %v745_v61 = vpop.f32.mrb[23].mxu1  ;;  %v140_v63 = vld [vmem:[#allocation2 + $0x1c8] sm:$0xff]  ;;  %v816_v4 = vadd.f32 %v585_v60, %v105_v46  ;;  %v107_v6 = vld [vmem:[#allocation2 + $0xc0] sm:$0xff] }
 0x107   :  { %911 = vst.msk [vmem:[#allocation2 + $0x1a0] sm:$0xff] %vm18_vm1, %v846_v45  ;;  %v1110_v57 = vmax.f32 %v1046_v48, 0.0  ;;  %v1077_v0 = vmax.f32 %v1013_v52, 0.0  ;;  %v945_v2 = vld [vmem:[#allocation2 + $0x98] sm:$0xff]  ;;  %v848_v5 = vadd.f32 %v745_v61, %v137_v51  ;;  %882 = vst.msk [vmem:[#allocation2 + $0xb8] sm:$0xff] %vm18_vm1, %v817_v58  ;;  %v139_v11 = vld [vmem:[#allocation2 + $0x1c0] sm:$0xff] }
 0x108   :  { %v1109_v1 = vmax.f32 %v1045_v53, 0.0  ;;  %v977_v3 = vld [vmem:[#allocation2 + $0x198] sm:$0xff]  ;;  %1142 = vst.msk [vmem:[%s2241_s3 + $0x88] sm:$0xff] %vm18_vm1, %v1078_v56  ;;  %v1016_v7 = vadd.f32 %v1858_v30, %v945_v2  ;;  %914 = vst.msk [vmem:[#allocation2 + $0x1b8] sm:$0xff] %vm18_vm1, %v849_v59  ;;  %v1364_v14 = vpop.f32.mrb[24].mxu0  ;;  %v1412_v15 = vpop.f32.mrb[24].mxu1 }
 0x109   :  { %1174 = vst.msk [vmem:[%s2241_s3 + $0x188] sm:$0xff] %vm18_vm1, %v1110_v57  ;;  %v1048_v8 = vadd.f32 %v1858_v30, %v977_v3  ;;  %v944_v9 = vld [vmem:[#allocation2 + $0x90] sm:$0xff]  ;;  %1141 = vst.msk [vmem:[%s2241_s3 + $0x80] sm:$0xff] %vm18_vm1, %v1077_v0  ;;  %v819_v18 = vadd.f32 %v1364_v14, %v108_v62  ;;  %v851_v19 = vadd.f32 %v1412_v15, %v140_v63  ;;  %v595_v20 = vpop.f32.mrb[25].mxu0  ;;  %v755_v21 = vpop.f32.mrb[25].mxu1  ;;  %v110_v22 = vld [vmem:[#allocation2 + $0xd8] sm:$0xff] }
 0x10a   :  { %v976_v10 = vld [vmem:[#allocation2 + $0x190] sm:$0xff]  ;;  %1173 = vst.msk [vmem:[%s2241_s3 + $0x180] sm:$0xff] %vm18_vm1, %v1109_v1  ;;  %v1015_v12 = vadd.f32 %v1858_v30, %v944_v9  ;;  %881 = vst.msk [vmem:[#allocation2 + $0xb0] sm:$0xff] %vm18_vm1, %v816_v4  ;;  %v1080_v16 = vmax.f32 %v1016_v7, 0.0  ;;  %v142_v23 = vld [vmem:[#allocation2 + $0x1d8] sm:$0xff]  ;;  %v818_v28 = vadd.f32 %v595_v20, %v107_v6  ;;  %v850_v29 = vadd.f32 %v755_v21, %v139_v11 }
 0x10b   :  { %v1047_v13 = vadd.f32 %v1858_v30, %v976_v10  ;;  %913 = vst.msk [vmem:[#allocation2 + $0x1b0] sm:$0xff] %vm18_vm1, %v848_v5  ;;  %v1112_v17 = vmax.f32 %v1048_v8, 0.0  ;;  %v947_v26 = vld [vmem:[#allocation2 + $0xa8] sm:$0xff]  ;;  %v109_v31 = vld [vmem:[#allocation2 + $0xd0] sm:$0xff]  ;;  %884 = vst.msk [vmem:[#allocation2 + $0xc8] sm:$0xff] %vm18_vm1, %v819_v18 }
 0x10c   :  { %v1079_v24 = vmax.f32 %v1015_v12, 0.0  ;;  %v979_v27 = vld [vmem:[#allocation2 + $0x1a8] sm:$0xff]  ;;  %1144 = vst.msk [vmem:[%s2241_s3 + $0x98] sm:$0xff] %vm18_vm1, %v1080_v16  ;;  %v1018_v32 = vadd.f32 %v1858_v30, %v947_v26  ;;  %916 = vst.msk [vmem:[#allocation2 + $0x1c8] sm:$0xff] %vm18_vm1, %v851_v19  ;;  %v141_v36 = vld [vmem:[#allocation2 + $0x1d0] sm:$0xff]  ;;  %v1367_v39 = vpop.f32.mrb[26].mxu0 }
 0x10d   :  { %v1111_v25 = vmax.f32 %v1047_v13, 0.0  ;;  %1176 = vst.msk [vmem:[%s2241_s3 + $0x198] sm:$0xff] %vm18_vm1, %v1112_v17  ;;  %v1050_v33 = vadd.f32 %v1858_v30, %v979_v27  ;;  %v946_v34 = vld [vmem:[#allocation2 + $0xa0] sm:$0xff]  ;;  %883 = vst.msk [vmem:[#allocation2 + $0xc0] sm:$0xff] %vm18_vm1, %v818_v28  ;;  %v1415_v40 = vpop.f32.mrb[26].mxu1  ;;  %v821_v43 = vadd.f32 %v1367_v39, %v110_v22  ;;  %v605_v45 = vpop.f32.mrb[27].mxu0 }
 0x10e   :  { %v978_v35 = vld [vmem:[#allocation2 + $0x1a0] sm:$0xff]  ;;  %1143 = vst.msk [vmem:[%s2241_s3 + $0x90] sm:$0xff] %vm18_vm1, %v1079_v24  ;;  %v1017_v37 = vadd.f32 %v1858_v30, %v946_v34  ;;  %915 = vst.msk [vmem:[#allocation2 + $0x1c0] sm:$0xff] %vm18_vm1, %v850_v29  ;;  %v1082_v41 = vmax.f32 %v1018_v32, 0.0  ;;  %v853_v44 = vadd.f32 %v1415_v40, %v142_v23  ;;  %v765_v46 = vpop.f32.mrb[27].mxu1  ;;  %v112_v47 = vld [vmem:[#allocation2 + $0xe8] sm:$0xff]  ;;  %v820_v53 = vadd.f32 %v605_v45, %v109_v31 }
 0x10f   :  { %1175 = vst.msk [vmem:[%s2241_s3 + $0x190] sm:$0xff] %vm18_vm1, %v1111_v25  ;;  %v1049_v38 = vadd.f32 %v1858_v30, %v978_v35  ;;  %v1114_v42 = vmax.f32 %v1050_v33, 0.0  ;;  %v144_v48 = vld [vmem:[#allocation2 + $0x1e8] sm:$0xff]  ;;  %v949_v51 = vld [vmem:[#allocation2 + $0xb8] sm:$0xff]  ;;  %v852_v54 = vadd.f32 %v765_v46, %v141_v36  ;;  %v111_v55 = vld [vmem:[#allocation2 + $0xe0] sm:$0xff] }
 0x110   :  { %v1081_v49 = vmax.f32 %v1017_v37, 0.0  ;;  %v981_v52 = vld [vmem:[#allocation2 + $0x1b8] sm:$0xff]  ;;  %1146 = vst.msk [vmem:[%s2241_s3 + $0xa8] sm:$0xff] %vm18_vm1, %v1082_v41  ;;  %v1020_v56 = vadd.f32 %v1858_v30, %v949_v51  ;;  %886 = vst.msk [vmem:[#allocation2 + $0xd8] sm:$0xff] %vm18_vm1, %v821_v43  ;;  %v143_v60 = vld [vmem:[#allocation2 + $0x1e0] sm:$0xff]  ;;  %v1370_v63 = vpop.f32.mrb[28].mxu0 }
 0x111   :  { %v1113_v50 = vmax.f32 %v1049_v38, 0.0  ;;  %1178 = vst.msk [vmem:[%s2241_s3 + $0x1a8] sm:$0xff] %vm18_vm1, %v1114_v42  ;;  %v1052_v57 = vadd.f32 %v1858_v30, %v981_v52  ;;  %v948_v58 = vld [vmem:[#allocation2 + $0xb0] sm:$0xff]  ;;  %918 = vst.msk [vmem:[#allocation2 + $0x1d8] sm:$0xff] %vm18_vm1, %v853_v44  ;;  %v1418_v0 = vpop.f32.mrb[28].mxu1  ;;  %v823_v3 = vadd.f32 %v1370_v63, %v112_v47  ;;  %v615_v5 = vpop.f32.mrb[29].mxu0 }
 0x112   :  { %v980_v59 = vld [vmem:[#allocation2 + $0x1b0] sm:$0xff]  ;;  %1145 = vst.msk [vmem:[%s2241_s3 + $0xa0] sm:$0xff] %vm18_vm1, %v1081_v49  ;;  %v1019_v61 = vadd.f32 %v1858_v30, %v948_v58  ;;  %885 = vst.msk [vmem:[#allocation2 + $0xd0] sm:$0xff] %vm18_vm1, %v820_v53  ;;  %v1084_v1 = vmax.f32 %v1020_v56, 0.0  ;;  %v855_v4 = vadd.f32 %v1418_v0, %v144_v48  ;;  %v775_v6 = vpop.f32.mrb[29].mxu1  ;;  %v114_v7 = vld [vmem:[#allocation2 + $0xf8] sm:$0xff]  ;;  %v822_v13 = vadd.f32 %v615_v5, %v111_v55 }
 0x113   :  { %1177 = vst.msk [vmem:[%s2241_s3 + $0x1a0] sm:$0xff] %vm18_vm1, %v1113_v50  ;;  %v1051_v62 = vadd.f32 %v1858_v30, %v980_v59  ;;  %917 = vst.msk [vmem:[#allocation2 + $0x1d0] sm:$0xff] %vm18_vm1, %v852_v54  ;;  %v1116_v2 = vmax.f32 %v1052_v57, 0.0  ;;  %v146_v8 = vld [vmem:[#allocation2 + $0x1f8] sm:$0xff]  ;;  %v951_v11 = vld [vmem:[#allocation2 + $0xc8] sm:$0xff]  ;;  %v854_v14 = vadd.f32 %v775_v6, %v143_v60 }
 0x114   :  { %v1083_v9 = vmax.f32 %v1019_v61, 0.0  ;;  %v983_v12 = vld [vmem:[#allocation2 + $0x1c8] sm:$0xff]  ;;  %v113_v15 = vld [vmem:[#allocation2 + $0xf0] sm:$0xff]  ;;  %1148 = vst.msk [vmem:[%s2241_s3 + $0xb8] sm:$0xff] %vm18_vm1, %v1084_v1  ;;  %v1022_v16 = vadd.f32 %v1858_v30, %v951_v11  ;;  %v950_v18 = vld [vmem:[#allocation2 + $0xc0] sm:$0xff]  ;;  %v1373_v23 = vpop.f32.mrb[30].mxu0 }
 0x115   :  { %v1115_v10 = vmax.f32 %v1051_v62, 0.0  ;;  %1180 = vst.msk [vmem:[%s2241_s3 + $0x1b8] sm:$0xff] %vm18_vm1, %v1116_v2  ;;  %v1054_v17 = vadd.f32 %v1858_v30, %v983_v12  ;;  %v982_v19 = vld [vmem:[#allocation2 + $0x1c0] sm:$0xff]  ;;  %888 = vst.msk [vmem:[#allocation2 + $0xe8] sm:$0xff] %vm18_vm1, %v823_v3  ;;  %v145_v20 = vld [vmem:[#allocation2 + $0x1f0] sm:$0xff]  ;;  %v1021_v21 = vadd.f32 %v1858_v30, %v950_v18  ;;  %v1421_v24 = vpop.f32.mrb[30].mxu1  ;;  %v825_v27 = vadd.f32 %v1373_v23, %v114_v7 }
 0x116   :  { %920 = vst.msk [vmem:[#allocation2 + $0x1e8] sm:$0xff] %vm18_vm1, %v855_v4  ;;  %1147 = vst.msk [vmem:[%s2241_s3 + $0xb0] sm:$0xff] %vm18_vm1, %v1083_v9  ;;  %v1053_v22 = vadd.f32 %v1858_v30, %v982_v19  ;;  %v1086_v25 = vmax.f32 %v1022_v16, 0.0  ;;  %v857_v28 = vadd.f32 %v1421_v24, %v146_v8  ;;  %v625_v29 = vpop.f32.mrb[31].mxu0  ;;  %v785_v31 = vpop.f32.mrb[31].mxu1 }
 0x117   :  { %1179 = vst.msk [vmem:[%s2241_s3 + $0x1b0] sm:$0xff] %vm18_vm1, %v1115_v10  ;;  %887 = vst.msk [vmem:[#allocation2 + $0xe0] sm:$0xff] %vm18_vm1, %v822_v13  ;;  %v1118_v26 = vmax.f32 %v1054_v17, 0.0  ;;  %v1085_v32 = vmax.f32 %v1021_v21, 0.0  ;;  %v953_v34 = vld [vmem:[#allocation2 + $0xd8] sm:$0xff]  ;;  %v824_v36 = vadd.f32 %v625_v29, %v113_v15  ;;  %v856_v37 = vadd.f32 %v785_v31, %v145_v20 }
 0x118   :  { %919 = vst.msk [vmem:[#allocation2 + $0x1e0] sm:$0xff] %vm18_vm1, %v854_v14  ;;  %v1117_v33 = vmax.f32 %v1053_v22, 0.0  ;;  %v985_v35 = vld [vmem:[#allocation2 + $0x1d8] sm:$0xff]  ;;  %1150 = vst.msk [vmem:[%s2241_s3 + $0xc8] sm:$0xff] %vm18_vm1, %v1086_v25  ;;  %v1024_v38 = vadd.f32 %v1858_v30, %v953_v34 }
 0x119   :  { %1182 = vst.msk [vmem:[%s2241_s3 + $0x1c8] sm:$0xff] %vm18_vm1, %v1118_v26  ;;  %v1056_v39 = vadd.f32 %v1858_v30, %v985_v35  ;;  %v952_v40 = vld [vmem:[#allocation2 + $0xd0] sm:$0xff]  ;;  %890 = vst.msk [vmem:[#allocation2 + $0xf8] sm:$0xff] %vm18_vm1, %v825_v27 }
 0x11a   :  { %v984_v41 = vld [vmem:[#allocation2 + $0x1d0] sm:$0xff]  ;;  %922 = vst.msk [vmem:[#allocation2 + $0x1f8] sm:$0xff] %vm18_vm1, %v857_v28  ;;  %1149 = vst.msk [vmem:[%s2241_s3 + $0xc0] sm:$0xff] %vm18_vm1, %v1085_v32  ;;  %v1023_v42 = vadd.f32 %v1858_v30, %v952_v40  ;;  %v1088_v44 = vmax.f32 %v1024_v38, 0.0 }
 0x11b   :  { %1181 = vst.msk [vmem:[%s2241_s3 + $0x1c0] sm:$0xff] %vm18_vm1, %v1117_v33  ;;  %v1055_v43 = vadd.f32 %v1858_v30, %v984_v41  ;;  %889 = vst.msk [vmem:[#allocation2 + $0xf0] sm:$0xff] %vm18_vm1, %v824_v36  ;;  %v1120_v45 = vmax.f32 %v1056_v39, 0.0 }
 0x11c   :  { %921 = vst.msk [vmem:[#allocation2 + $0x1f0] sm:$0xff] %vm18_vm1, %v856_v37  ;;  %v1087_v46 = vmax.f32 %v1023_v42, 0.0  ;;  %v955_v48 = vld [vmem:[#allocation2 + $0xe8] sm:$0xff]  ;;  %1152 = vst.msk [vmem:[%s2241_s3 + $0xd8] sm:$0xff] %vm18_vm1, %v1088_v44 }
 0x11d   :  { %v1119_v47 = vmax.f32 %v1055_v43, 0.0  ;;  %v987_v49 = vld [vmem:[#allocation2 + $0x1e8] sm:$0xff]  ;;  %1184 = vst.msk [vmem:[%s2241_s3 + $0x1d8] sm:$0xff] %vm18_vm1, %v1120_v45  ;;  %v1026_v50 = vadd.f32 %v1858_v30, %v955_v48 }
 0x11e   :  { %v1058_v51 = vadd.f32 %v1858_v30, %v987_v49  ;;  %v954_v52 = vld [vmem:[#allocation2 + $0xe0] sm:$0xff]  ;;  %1151 = vst.msk [vmem:[%s2241_s3 + $0xd0] sm:$0xff] %vm18_vm1, %v1087_v46 }
 0x11f   :  { %v986_v53 = vld [vmem:[#allocation2 + $0x1e0] sm:$0xff]  ;;  %1183 = vst.msk [vmem:[%s2241_s3 + $0x1d0] sm:$0xff] %vm18_vm1, %v1119_v47  ;;  %v1025_v54 = vadd.f32 %v1858_v30, %v954_v52  ;;  %v1090_v56 = vmax.f32 %v1026_v50, 0.0 }
 0x120   :  { %v1057_v55 = vadd.f32 %v1858_v30, %v986_v53  ;;  %v1122_v57 = vmax.f32 %v1058_v51, 0.0  ;;  %v957_v60 = vld [vmem:[#allocation2 + $0xf8] sm:$0xff] }
 0x121   :  { %v1089_v58 = vmax.f32 %v1025_v54, 0.0  ;;  %v989_v61 = vld [vmem:[#allocation2 + $0x1f8] sm:$0xff]  ;;  %1154 = vst.msk [vmem:[%s2241_s3 + $0xe8] sm:$0xff] %vm18_vm1, %v1090_v56  ;;  %v1028_v62 = vadd.f32 %v1858_v30, %v957_v60 }
 0x122   :  { %v1121_v59 = vmax.f32 %v1057_v55, 0.0  ;;  %1186 = vst.msk [vmem:[%s2241_s3 + $0x1e8] sm:$0xff] %vm18_vm1, %v1122_v57  ;;  %v1060_v63 = vadd.f32 %v1858_v30, %v989_v61  ;;  %v956_v0 = vld [vmem:[#allocation2 + $0xf0] sm:$0xff] }
 0x123   :  { %v988_v1 = vld [vmem:[#allocation2 + $0x1f0] sm:$0xff]  ;;  %1153 = vst.msk [vmem:[%s2241_s3 + $0xe0] sm:$0xff] %vm18_vm1, %v1089_v58  ;;  %v1027_v2 = vadd.f32 %v1858_v30, %v956_v0  ;;  %v1092_v4 = vmax.f32 %v1028_v62, 0.0 }
 0x124   :  { %1185 = vst.msk [vmem:[%s2241_s3 + $0x1e0] sm:$0xff] %vm18_vm1, %v1121_v59  ;;  %v1059_v3 = vadd.f32 %v1858_v30, %v988_v1  ;;  %v1124_v5 = vmax.f32 %v1060_v63, 0.0 }
 0x125   :  { %v1091_v6 = vmax.f32 %v1027_v2, 0.0  ;;  %1156 = vst.msk [vmem:[%s2241_s3 + $0xf8] sm:$0xff] %vm18_vm1, %v1092_v4 }
 0x126   :  { %v1123_v7 = vmax.f32 %v1059_v3, 0.0  ;;  %1188 = vst.msk [vmem:[%s2241_s3 + $0x1f8] sm:$0xff] %vm18_vm1, %v1124_v5 }
 0x127   :  { %1155 = vst.msk [vmem:[%s2241_s3 + $0xf0] sm:$0xff] %vm18_vm1, %v1091_v6 }
 0x128   :  { %1187 = vst.msk [vmem:[%s2241_s3 + $0x1f0] sm:$0xff] %vm18_vm1, %v1123_v7 }

// kernel: strided_block_forward.4
= control target key start
LH: loop header
LB: loop body
LE: loop exit
PB: predicated region body
PF: predicated region fallthrough
CT: control target
= control target key end

     0   :  { %s2213_s21 = smov 0   ;;  %s2486_s0 = inlined_call_operand.vmem [shape: f32[2,9,9,8], index: 0, kind: input, shape index: {}]   ;;  %s2487_s1 = inlined_call_operand.vmem [shape: f32[2,9,9,8], index: 1, kind: input, shape index: {}]   ;;  %s2488_s2 = inlined_call_operand.vmem [shape: f32[2,9,9,8], index: 2, kind: input, shape index: {}]   ;;  %s2489_s3 = inlined_call_operand.vmem [shape: f32[2,9,9,8], index: 3, kind: input, shape index: {}]   ;;  %s2490_s4 = inlined_call_operand.vmem [shape: f32[9,8,8], index: 4, kind: input, shape index: {}]   ;;  %s2491_s5 = inlined_call_operand.vmem [shape: f32[1,8], index: 5, kind: input, shape index: {}]   ;;  %s2492_s6 = inlined_call_operand.vmem [shape: f32[2,8,8,8], index: 6, kind: output, shape index: {}]  }
   0x1 LB: > { %s1745_s22 = sadd.s32 4294967295, %s2176_s21   ;;  %p1749_p0 = scmp.ge.s32.totalorder %s2176_s21, 1  ;;  %s2176_s21 = sphi %s2213_s21, %s16_s21  }
   0x2   : > { %p242_p1 = scmp.lt.s32.totalorder %s2176_s21, 3 }
   0x4   : > { %p243_p2 = pnand %p1749_p0, %p242_p1 }
   0x5   : > { %v1773_v0 = vld [vmem:[%s2490_s4 + $0x28] sm:$0xff] (!%p243_p2)  ;;  %p287_p3 = scmp.lt.s32.totalorder (!%p243_p2), %s1745_s22, 1  ;;  %v1764_v2 = vld [vmem:[%s2490_s4 + $0x20] sm:$0xff] (!%p243_p2)  ;;  %vm334_vm0 = vcmask (!%p243_p2), 64512   ;;  %v1858_v10 = vld [vmem:[%s2490_s4 + $0x30] sm:$0xff] (!%p243_p2) }
   0x6   : > { %246 = sbr.rel (%p243_p2) target bundleno = 308 (0x134), region = 44  ;;  %v2227_v1 = vld [vmem:[%s2490_s4 + $0x8] sm:$0xff] (!%p243_p2)  ;;  %1969 = vmatprep.subr.mxu1 (!%p243_p2), %v1773_v0  ;;  %v1841_v3 = vld [vmem:[%s2490_s4 + $0x40] sm:$0xff] (!%p243_p2)  ;;  %v1798_v12 = vld [vmem:[%s2490_s4 + $0x18] sm:$0xff] (!%p243_p2) }
   0x7   : > { %2025 = vmatprep.subr.mxu0 (!%p243_p2), %v2227_v1  ;;  %1970 = vmatpush3.msra.mxu1 (!%p243_p2), %v1773_v0  ;;  %v1867_v20 = vld [vmem:[%s2490_s4 + $0x10] sm:$0xff] (!%p243_p2)  ;;  %v1815_v29 = vld [vmem:[%s2490_s4 + $0x38] sm:$0xff] (!%p243_p2)  ;;  %v1485_v38 = vld [vmem:[%s2490_s4] sm:$0xff] (!%p243_p2) }
   0x8   : > { %2026 = vmatpush3.msra.mxu0 (!%p243_p2), %v2227_v1  ;;  %1983 = vmatprep.subr.mxu1 (!%p243_p2), %v1764_v2 }
   0x9   : > { %2039 = vmatprep.subr.mxu0 (!%p243_p2), %v1841_v3 }
   0xd   : > { %s2494_s22 = smov (!%p287_p3, %s1745_s22), 1 }
   0xe   : > { %s2240_s7 = smul.u32 144, %s2494_s22 }
  0x10   : > { %s2246_s10 = scalar_lea.vmem %s2487_s1, %s2240_s7  ;;  %s2253_s13 = scalar_lea.vmem %s2488_s2, %s2240_s7 }
  0x11   : > { %v1765_v4 = vld [vmem:[%s2246_s10 + $0x11] sm:$0xff]  ;;  %v1766_v5 = vld [vmem:[%s2246_s10 + $0x21] sm:$0xff]  ;;  %s2266_s16 = scalar_lea.vmem %s2489_s3, %s2240_s7  ;;  %s2310_s25 = scalar_lea.vmem %s2486_s0, %s2240_s7 }
  0x12   : > { %1971 = vmatprep.mubr.msk.f32.mxu1 %vm334_vm0, %v1765_v4  ;;  %v888_v6 = vld [vmem:[%s2253_s13 + $0x1] sm:$0xff]  ;;  %v2259_v7 = vld [vmem:[%s2253_s13 + $0x11] sm:$0xff] }
  0x13   : > { %v1767_v8 = vld [vmem:[%s2246_s10 + $0x31] sm:$0xff]  ;;  %2027 = vmatprep.mubr.msk.f32.mxu0 %vm334_vm0, %v888_v6  ;;  %1972 = vmatmul.mubr.msk.f32.vlgmr.msra.gmra.mrb[0].mxu1 %vm334_vm0, %v1766_v5  ;;  %v2271_v9 = vld [vmem:[%s2253_s13 + $0x21] sm:$0xff] }
  0x14   : > { %1984 = vmatpush3.msra.mxu1 %v1764_v2  ;;  %2028 = vmatmul.mubr.msk.f32.vlgmr.msra.gmra.mrb[0].mxu0 %vm334_vm0, %v2259_v7  ;;  %v1768_v11 = vld [vmem:[%s2246_s10 + $0x41] sm:$0xff]  ;;  %v2284_v13 = vld [vmem:[%s2253_s13 + $0x31] sm:$0xff] }
  0x15   : > { %2040 = vmatpush3.msra.mxu0 %v1841_v3  ;;  %1974 = vmatprep.mubr.msk.f32.mxu1 %vm334_vm0, %v1767_v8  ;;  %v1769_v14 = vld [vmem:[%s2246_s10 + $0x51] sm:$0xff]  ;;  %v1770_v16 = vld [vmem:[%s2246_s10 + $0x61] sm:$0xff] }
  0x16   : > { %2030 = vmatprep.mubr.msk.f32.mxu0 %vm334_vm0, %v2271_v9  ;;  %v2290_v15 = vld [vmem:[%s2266_s16 + $0x11] sm:$0xff]  ;;  %2053 = vmatprep.subr.mxu0 %v1858_v10  ;;  %v2300_v17 = vld [vmem:[%s2266_s16 + $0x21] sm:$0xff] }
  0x17   : > { %1975 = vmatmul.mubr.msk.f32.gmra.mrb[2].mxu1 %vm334_vm0, %v1768_v11  ;;  %1997 = vmatprep.subr.mxu1 %v1798_v12  ;;  %v1771_v18 = vld [vmem:[%s2246_s10 + $0x71] sm:$0xff]  ;;  %v1772_v21 = vld [vmem:[%s2246_s10 + $0x81] sm:$0xff] }
  0x18   : > { %2031 = vmatmul.mubr.msk.f32.gmra.mrb[2].mxu0 %vm334_vm0, %v2284_v13  ;;  %1977 = vmatprep.mubr.msk.f32.mxu1 %vm334_vm0, %v1769_v14  ;;  %v2304_v19 = vld [vmem:[%s2266_s16 + $0x31] sm:$0xff]  ;;  %v2323_v22 = vld [vmem:[%s2266_s16 + $0x41] sm:$0xff] }
  0x19   : > { %2041 = vmatprep.mubr.msk.f32.mxu0 %vm334_vm0, %v2290_v15  ;;  %v1756_v23 = vld [vmem:[%s2310_s25 + $0x11] sm:$0xff]  ;;  %v1757_v25 = vld [vmem:[%s2310_s25 + $0x21] sm:$0xff] }
  0x1a   : > { %v2327_v24 = vld [vmem:[%s2266_s16 + $0x51] sm:$0xff]  ;;  %v2337_v26 = vld [vmem:[%s2266_s16 + $0x61] sm:$0xff] }
  0x1b   : > { %1978 = vmatmul.mubr.msk.f32.gmra.mrb[4].mxu1 %vm334_vm0, %v1770_v16  ;;  %v1758_v27 = vld [vmem:[%s2310_s25 + $0x31] sm:$0xff]  ;;  %v1759_v30 = vld [vmem:[%s2310_s25 + $0x41] sm:$0xff] }
  0x1c   : > { %2042 = vmatmul.mubr.msk.f32.vlgmr.msra.gmra.mrb[0].mxu0 %vm334_vm0, %v2300_v17  ;;  %1980 = vmatprep.mubr.msk.f32.mxu1 %vm334_vm0, %v1771_v18  ;;  %v2341_v28 = vld [vmem:[%s2266_s16 + $0x71] sm:$0xff]  ;;  %v1840_v31 = vld [vmem:[%s2266_s16 + $0x81] sm:$0xff] }
  0x1d   : > { %2054 = vmatpush3.msra.mxu0 %v1858_v10  ;;  %2044 = vmatprep.mubr.msk.f32.mxu0 %vm334_vm0, %v2304_v19  ;;  %v1760_v32 = vld [vmem:[%s2310_s25 + $0x51] sm:$0xff]  ;;  %v1761_v34 = vld [vmem:[%s2310_s25 + $0x61] sm:$0xff] }
  0x1e   : > { %2067 = vmatprep.subr.mxu0 %v1867_v20  ;;  %v2356_v33 = vld [vmem:[%s2266_s16 + $0x10] sm:$0xff]  ;;  %v2365_v35 = vld [vmem:[%s2266_s16 + $0x20] sm:$0xff] }
  0x1f   : > { %1981 = vmatmul.mubr.msk.f32.gmra.mrb[6].mxu1 %vm334_vm0, %v1772_v21  ;;  %v1762_v36 = vld [vmem:[%s2310_s25 + $0x71] sm:$0xff]  ;;  %v1763_v39 = vld [vmem:[%s2310_s25 + $0x81] sm:$0xff] }
  0x20   : > { %2045 = vmatmul.mubr.msk.f32.gmra.mrb[2].mxu0 %vm334_vm0, %v2323_v22  ;;  %1985 = vmatprep.mubr.msk.f32.mxu1 %vm334_vm0, %v1756_v23  ;;  %v2369_v37 = vld [vmem:[%s2266_s16 + $0x30] sm:$0xff]  ;;  %v1853_v40 = vld [vmem:[%s2266_s16 + $0x40] sm:$0xff] }
  0x21   : > { %2047 = vmatprep.mubr.msk.f32.mxu0 %vm334_vm0, %v2327_v24  ;;  %v1790_v41 = vld [vmem:[%s2246_s10 + $0x10] sm:$0xff]  ;;  %v1791_v43 = vld [vmem:[%s2246_s10 + $0x20] sm:$0xff] }
  0x22   : > { %v1854_v42 = vld [vmem:[%s2266_s16 + $0x50] sm:$0xff]  ;;  %v1855_v44 = vld [vmem:[%s2266_s16 + $0x60] sm:$0xff] }
  0x23   : > { %1986 = vmatmul.mubr.msk.f32.vlgmr.msra.gmra.mrb[0].mxu1 %vm334_vm0, %v1757_v25  ;;  %v1792_v45 = vld [vmem:[%s2246_s10 + $0x30] sm:$0xff]  ;;  %v1793_v47 = vld [vmem:[%s2246_s10 + $0x40] sm:$0xff] }
  0x24   : > { %1998 = vmatpush3.msra.mxu1 %v1798_v12  ;;  %2048 = vmatmul.mubr.msk.f32.gmra.mrb[4].mxu0 %vm334_vm0, %v2337_v26  ;;  %v1856_v46 = vld [vmem:[%s2266_s16 + $0x70] sm:$0xff]  ;;  %v1857_v48 = vld [vmem:[%s2266_s16 + $0x80] sm:$0xff] }
  0x25   : > { %1988 = vmatprep.mubr.msk.f32.mxu1 %vm334_vm0, %v1758_v27  ;;  %2050 = vmatprep.mubr.msk.f32.mxu0 %vm334_vm0, %v2341_v28  ;;  %v1794_v49 = vld [vmem:[%s2246_s10 + $0x50] sm:$0xff]  ;;  %v1330_v50 = vld [vmem:[%s2266_s16 + $0x1] sm:$0xff] }
  0x26   : > { %2011 = vmatprep.subr.mxu1 %v1815_v29  ;;  %v1795_v51 = vld [vmem:[%s2246_s10 + $0x60] sm:$0xff]  ;;  %v1796_v52 = vld [vmem:[%s2246_s10 + $0x70] sm:$0xff] }
  0x27   : > { %1989 = vmatmul.mubr.msk.f32.gmra.mrb[2].mxu1 %vm334_vm0, %v1759_v30  ;;  %v1797_v53 = vld [vmem:[%s2246_s10 + $0x80] sm:$0xff]  ;;  %v1811_v55 = vld [vmem:[%s2253_s13 + $0x51] sm:$0xff]  ;;  %s1887_s10 = sshll.u32 %s2494_s22, 6 }
  0x28   : > { %2051 = vmatmul.mubr.msk.f32.gmra.mrb[6].mxu0 %vm334_vm0, %v1840_v31  ;;  %1991 = vmatprep.mubr.msk.f32.mxu1 %vm334_vm0, %v1760_v32  ;;  %v1810_v54 = vld [vmem:[%s2253_s13 + $0x41] sm:$0xff]  ;;  %v1813_v58 = vld [vmem:[%s2253_s13 + $0x71] sm:$0xff] }
  0x29   : > { %2055 = vmatprep.mubr.msk.f32.mxu0 %vm334_vm0, %v2356_v33  ;;  %v1477_v56 = vld [vmem:[%s2266_s16] sm:$0xff] }
  0x2a   : > { %v1812_v57 = vld [vmem:[%s2253_s13 + $0x61] sm:$0xff] }
  0x2b   : > { %1992 = vmatmul.mubr.msk.f32.gmra.mrb[4].mxu1 %vm334_vm0, %v1761_v34  ;;  %v1814_v59 = vld [vmem:[%s2253_s13 + $0x81] sm:$0xff]  ;;  %s2465_s13 = scalar_lea.vmem %s2492_s6, %s1887_s10 }
  0x2c   : > { %2056 = vmatmul.mubr.msk.f32.vlgmr.msra.gmra.mrb[0].mxu0 %vm334_vm0, %v2365_v35  ;;  %1994 = vmatprep.mubr.msk.f32.mxu1 %vm334_vm0, %v1762_v36 }
  0x2d   : > { %2068 = vmatpush3.msra.mxu0 %v1867_v20  ;;  %2058 = vmatprep.mubr.msk.f32.mxu0 %vm334_vm0, %v2369_v37 }
  0x2e   : > { %2081 = vmatprep.subr.mxu0 %v1485_v38 }
  0x2f   : > { %1995 = vmatmul.mubr.msk.f32.gmra.mrb[6].mxu1 %vm334_vm0, %v1763_v39 }
  0x30   : > { %2059 = vmatmul.mubr.msk.f32.gmra.mrb[2].mxu0 %vm334_vm0, %v1853_v40  ;;  %1999 = vmatprep.mubr.msk.f32.mxu1 %vm334_vm0, %v1790_v41 }
  0x31   : > { %2061 = vmatprep.mubr.msk.f32.mxu0 %vm334_vm0, %v1854_v42 }
  0x33   : > { %2000 = vmatmul.mubr.msk.f32.vlgmr.msra.gmra.mrb[0].mxu1 %vm334_vm0, %v1791_v43 }
  0x34   : > { %2012 = vmatpush3.msra.mxu1 %v1815_v29  ;;  %2062 = vmatmul.mubr.msk.f32.gmra.mrb[4].mxu0 %vm334_vm0, %v1855_v44 }
  0x35   : > { %2002 = vmatprep.mubr.msk.f32.mxu1 %vm334_vm0, %v1792_v45  ;;  %2064 = vmatprep.mubr.msk.f32.mxu0 %vm334_vm0, %v1856_v46 }
  0x36   : > { %2095 = vmatprep.subr.mxu1 %v2227_v1 }
  0x37   : > { %2003 = vmatmul.mubr.msk.f32.gmra.mrb[2].mxu1 %vm334_vm0, %v1793_v47 }
  0x38   : > { %2065 = vmatmul.mubr.msk.f32.gmra.mrb[6].mxu0 %vm334_vm0, %v1857_v48  ;;  %2005 = vmatprep.mubr.msk.f32.mxu1 %vm334_vm0, %v1794_v49 }
  0x39   : > { %2069 = vmatprep.mubr.msk.f32.mxu0 %vm334_vm0, %v1330_v50 }
  0x3b   : > { %2006 = vmatmul.mubr.msk.f32.gmra.mrb[4].mxu1 %vm334_vm0, %v1795_v51 }
  0x3c   : > { %2070 = vmatmul.mubr.msk.f32.vlgmr.msra.gmra.mrb[0].mxu0 %vm334_vm0, %v2290_v15  ;;  %2008 = vmatprep.mubr.msk.f32.mxu1 %vm334_vm0, %v1796_v52 }
  0x3d   : > { %2082 = vmatpush3.msra.mxu0 %v1485_v38  ;;  %2072 = vmatprep.mubr.msk.f32.mxu0 %vm334_vm0, %v2300_v17 }
  0x3f   : > { %2009 = vmatmul.mubr.msk.f32.gmra.mrb[6].mxu1 %vm334_vm0, %v1797_v53 }
  0x40   : > { %2073 = vmatmul.mubr.msk.f32.gmra.mrb[2].mxu0 %vm334_vm0, %v2304_v19  ;;  %2013 = vmatprep.mubr.msk.f32.mxu1 %vm334_vm0, %v2259_v7 }
  0x41   : > { %2075 = vmatprep.mubr.msk.f32.mxu0 %vm334_vm0, %v2323_v22 }
  0x43   : > { %2014 = vmatmul.mubr.msk.f32.vlgmr.msra.gmra.mrb[0].mxu1 %vm334_vm0, %v2271_v9 }
  0x44   : > { %2096 = vmatpush3.msra.mxu1 %v2227_v1  ;;  %2076 = vmatmul.mubr.msk.f32.gmra.mrb[4].mxu0 %vm334_vm0, %v2327_v24  ;;  %v1884_v1 = vld [vmem:[%s2491_s5] ss:$0 sm:$0xff] }
  0x45   : > { %2016 = vmatprep.mubr.msk.f32.mxu1 %vm334_vm0, %v2284_v13  ;;  %2078 = vmatprep.mubr.msk.f32.mxu0 %vm334_vm0, %v2337_v26 }
  0x47   : > { %2017 = vmatmul.mubr.msk.f32.gmra.mrb[2].mxu1 %vm334_vm0, %v1810_v54 }
  0x48   : > { %2079 = vmatmul.mubr.msk.f32.gmra.mrb[6].mxu0 %vm334_vm0, %v2341_v28  ;;  %2019 = vmatprep.mubr.msk.f32.mxu1 %vm334_vm0, %v1811_v55 }
  0x49   : > { %2083 = vmatprep.mubr.msk.f32.mxu0 %vm334_vm0, %v1477_v56 }
  0x4b   : > { %2020 = vmatmul.mubr.msk.f32.gmra.mrb[4].mxu1 %vm334_vm0, %v1812_v57 }
  0x4c   : > { %2084 = vmatmul.mubr.msk.f32.vlgmr.msra.gmra.mrb[0].mxu0 %vm334_vm0, %v2356_v33  ;;  %2022 = vmatprep.mubr.msk.f32.mxu1 %vm334_vm0, %v1813_v58 }
  0x4d   : > { %2086 = vmatprep.mubr.msk.f32.mxu0 %vm334_vm0, %v2365_v35 }
  0x4f   : > { %2023 = vmatmul.mubr.msk.f32.gmra.mrb[6].mxu1 %vm334_vm0, %v1814_v59 }
  0x50   : > { %2087 = vmatmul.mubr.msk.f32.gmra.mrb[2].mxu0 %vm334_vm0, %v2369_v37  ;;  %2033 = vmatprep.mubr.msk.f32.mxu1 %vm334_vm0, %v1810_v54 }
  0x51   : > { %2089 = vmatprep.mubr.msk.f32.mxu0 %vm334_vm0, %v1853_v40 }
  0x53   : > { %2034 = vmatmul.mubr.msk.f32.vlgmr.msra.gmra.mrb[4].mxu1 %vm334_vm0, %v1811_v55 }
  0x54   : > { %2090 = vmatmul.mubr.msk.f32.gmra.mrb[4].mxu0 %vm334_vm0, %v1854_v42  ;;  %2036 = vmatprep.mubr.msk.f32.mxu1 %vm334_vm0, %v1812_v57 }
  0x55   : > { %2092 = vmatprep.mubr.msk.f32.mxu0 %vm334_vm0, %v1855_v44 }
  0x57   : > { %2037 = vmatmul.mubr.msk.f32.gmra.mrb[6].mxu1 %vm334_vm0, %v1813_v58 }
  0x58   : > { %2093 = vmatmul.mubr.msk.f32.gmra.mrb[6].mxu0 %vm334_vm0, %v1856_v46 }
 0x116   : > { %v2015_v60 = vpop.f32.mrb[0].mxu1 }
 0x117   : > { %v841_v61 = vpop.f32.mrb[1].mxu1 }
 0x11a   : > { %v2018_v62 = vpop.f32.mrb[2].mxu1 }
 0x11b   : > { %v851_v63 = vpop.f32.mrb[3].mxu1 }
 0x11f   : > { %v2085_v0 = vpop.f32.mrb[0].mxu0 }
 0x120   : > { %v2097_v2 = vadd.f32 %v2085_v0, %v2015_v60  ;;  %v1576_v3 = vpop.f32.mrb[1].mxu0 }
 0x121   : > { %v2098_v4 = vadd.f32 %v1576_v3, %v841_v61 }
 0x122   : > { %v1631_v5 = vadd.f32 %v2097_v2, %v1884_v1 }
 0x123   : > { %v1630_v6 = vadd.f32 %v2098_v4, %v1884_v1  ;;  %v2088_v7 = vpop.f32.mrb[2].mxu0 }
 0x124   : > { %v1639_v8 = vmax.f32 %v1631_v5, 0.0  ;;  %v2099_v9 = vadd.f32 %v2088_v7, %v2018_v62  ;;  %v1586_v10 = vpop.f32.mrb[3].mxu0 }
 0x125   : > { %v1638_v11 = vmax.f32 %v1630_v6, 0.0  ;;  %v2100_v12 = vadd.f32 %v1586_v10, %v851_v63 }
 0x126   : > { %1647 = vst.msk [vmem:[%s2465_s13 + $0x8] sm:$0xff] %vm334_vm0, %v1639_v8  ;;  %v1633_v13 = vadd.f32 %v2099_v9, %v1884_v1  ;;  %v2035_v14 = vpop.f32.mrb[4].mxu1 }
 0x127   : > { %1646 = vst.msk [vmem:[%s2465_s13] sm:$0xff] %vm334_vm0, %v1638_v11  ;;  %v1632_v15 = vadd.f32 %v2100_v12, %v1884_v1  ;;  %v2091_v16 = vpop.f32.mrb[4].mxu0  ;;  %v1008_v17 = vpop.f32.mrb[5].mxu1 }
 0x128   : > { %v1641_v18 = vmax.f32 %v1633_v13, 0.0  ;;  %v2101_v19 = vadd.f32 %v2091_v16, %v2035_v14  ;;  %v1596_v20 = vpop.f32.mrb[5].mxu0 }
 0x129   : > { %v1640_v21 = vmax.f32 %v1632_v15, 0.0  ;;  %v2102_v22 = vadd.f32 %v1596_v20, %v1008_v17 }
 0x12a   : > { %1649 = vst.msk [vmem:[%s2465_s13 + $0x18] sm:$0xff] %vm334_vm0, %v1641_v18  ;;  %v1635_v23 = vadd.f32 %v2101_v19, %v1884_v1  ;;  %v2038_v24 = vpop.f32.mrb[6].mxu1 }
 0x12b   : > { %1648 = vst.msk [vmem:[%s2465_s13 + $0x10] sm:$0xff] %vm334_vm0, %v1640_v21  ;;  %v1634_v25 = vadd.f32 %v2102_v22, %v1884_v1  ;;  %v2094_v26 = vpop.f32.mrb[6].mxu0  ;;  %v1018_v27 = vpop.f32.mrb[7].mxu1 }
 0x12c   : > { %v1643_v28 = vmax.f32 %v1635_v23, 0.0  ;;  %v2103_v29 = vadd.f32 %v2094_v26, %v2038_v24  ;;  %v1606_v30 = vpop.f32.mrb[7].mxu0 }
 0x12d   : > { %v1642_v31 = vmax.f32 %v1634_v25, 0.0  ;;  %v2104_v32 = vadd.f32 %v1606_v30, %v1018_v27 }
 0x12e   : > { %1651 = vst.msk [vmem:[%s2465_s13 + $0x28] sm:$0xff] %vm334_vm0, %v1643_v28  ;;  %v1637_v33 = vadd.f32 %v2103_v29, %v1884_v1 }
 0x12f   : > { %1650 = vst.msk [vmem:[%s2465_s13 + $0x20] sm:$0xff] %vm334_vm0, %v1642_v31  ;;  %v1636_v34 = vadd.f32 %v2104_v32, %v1884_v1 }
 0x130   : > { %v1645_v35 = vmax.f32 %v1637_v33, 0.0 }
 0x131   : > { %v1644_v36 = vmax.f32 %v1636_v34, 0.0 }
 0x132   : > { %1653 = vst.msk [vmem:[%s2465_s13 + $0x38] sm:$0xff] %vm334_vm0, %v1645_v35 }
 0x133   : > { %1652 = vst.msk [vmem:[%s2465_s13 + $0x30] sm:$0xff] %vm334_vm0, %v1644_v36 }
 0x134 PF: > { %s16_s21 = sadd.s32 1, %s2176_s21  }
 0x135   : > { %p13_p4 = scmp.ge.s32.totalorder %s16_s21, 4  }
 0x137   :  { %15 = sbr.rel (!%p13_p4) target bundleno = 1 (0x1), region = 95 }

</bundles_post_ra>
